<compile_context>
chip_gen: v6e
topology: v6e:2x2x1
jax: 0.10.0
libtpu: 0.0.40
codegen_flags: <defaults>
</compile_context>

<pallas_src>
import numpy as np
import jax
import jax.numpy as jnp
from jax import lax
from jax.experimental import pallas as pl
from jax.experimental.pallas import tpu as pltpu

# ---- small synthetic shapes consistent with PSPHead ----
B = 2
C_IN = 32            # in_channels (2048 in the real model)
C_OUT = 16           # channels    (512  in the real model)
H = W = 12           # divisible by every pool scale
HW = H * W
HWP = ((HW + 127) // 128) * 128          # spatial axis padded to lane-dense 256
POOL_SCALES = (1, 2, 3, 6)
NUM_SCALES = len(POOL_SCALES)
EPS = 1e-5
C_TOT = C_IN + NUM_SCALES * C_OUT        # 96

# factored pool/upsample matrices are stacked along sublanes at 8-aligned offsets
_SQ = tuple(s * s for s in POOL_SCALES)                       # (1, 4, 9, 36)
POOL_PAD = tuple(((q + 7) // 8) * 8 for q in _SQ)             # (8, 8, 16, 40)
POOL_OFF = tuple(int(sum(POOL_PAD[:i])) for i in range(NUM_SCALES))   # (0, 8, 16, 32)
POOL_TOT = int(sum(POOL_PAD))                                 # 72


# ---------------- host-side helpers: pooling / bilinear / tap masks ----------------
def _adaptive_pool_matrix(out_size, in_size):
    m = np.zeros((out_size, in_size), np.float32)
    for k in range(out_size):
        start = (k * in_size) // out_size
        end = -(-((k + 1) * in_size) // out_size)      # ceil
        m[k, start:end] = 1.0 / (end - start)
    return m


def _bilinear_matrix(out_size, in_size):
    # F.interpolate(mode='bilinear', align_corners=False) row weights (rows sum to 1).
    m = np.zeros((out_size, in_size), np.float32)
    scale = in_size / out_size
    for i in range(out_size):
        src = max((i + 0.5) * scale - 0.5, 0.0)
        i0 = min(int(np.floor(src)), in_size - 1)
        i1 = min(i0 + 1, in_size - 1)
        w1 = src - i0
        m[i, i0] += 1.0 - w1
        m[i, i1] += w1
    return m


def _pool_mat_2d(s):                       # (s*s, H*W)
    ph = _adaptive_pool_matrix(s, H)
    pw = _adaptive_pool_matrix(s, W)
    return np.einsum('ai,bj->abij', ph, pw).reshape(s * s, HW)


def _upsample_mat_2d(s):                   # (H*W, s*s)
    uh = _bilinear_matrix(H, s)
    uw = _bilinear_matrix(W, s)
    return np.einsum('ia,jb->ijab', uh, uw).reshape(HW, s * s)


def _tap_masks():
    # masks[t, p] = 1 iff the 3x3 tap t's source pixel of output pixel p is inside the
    # image (encodes the conv's zero padding); pad lanes (p >= HW) are 0.
    m = np.zeros((9, HWP), np.float32)
    for t in range(9):
        oy, ox = t // 3 - 1, t % 3 - 1
        for h in range(H):
            if not (0 <= h + oy < H):
                continue
            for w in range(W):
                if 0 <= w + ox < W:
                    m[t, h * W + w] = 1.0
    return m


# ---------------- parameters (deterministic, in-script) ----------------
def init_params(key):
    keys = jax.random.split(key, 5 * NUM_SCALES + 5)
    ki = 0
    params = {"ppm": {}}
    for s in POOL_SCALES:
        w1 = 0.05 * jax.random.normal(keys[ki], (C_IN, C_OUT), jnp.float32); ki += 1
        gamma = 1.0 + 0.1 * jax.random.normal(keys[ki], (C_OUT,), jnp.float32); ki += 1
        beta = 0.1 * jax.random.normal(keys[ki], (C_OUT,), jnp.float32); ki += 1
        mean = 0.1 * jax.random.normal(keys[ki], (C_OUT,), jnp.float32); ki += 1
        var = 0.5 + jnp.abs(jax.random.normal(keys[ki], (C_OUT,), jnp.float32)); ki += 1
        params["ppm"][s] = {"w1": w1, "gamma": gamma, "beta": beta, "mean": mean, "var": var}
    w3 = 0.02 * jax.random.normal(keys[ki], (9, C_TOT, C_OUT), jnp.float32); ki += 1
    gamma2 = 1.0 + 0.1 * jax.random.normal(keys[ki], (C_OUT,), jnp.float32); ki += 1
    beta2 = 0.1 * jax.random.normal(keys[ki], (C_OUT,), jnp.float32); ki += 1
    mean2 = 0.1 * jax.random.normal(keys[ki], (C_OUT,), jnp.float32); ki += 1
    var2 = 0.5 + jnp.abs(jax.random.normal(keys[ki], (C_OUT,), jnp.float32)); ki += 1
    params.update({"w3": w3, "gamma2": gamma2, "beta2": beta2, "mean2": mean2, "var2": var2})
    return params


def prepare_kernel_operands(params):
    """Host-side folding: BN scales into conv weights; BN shifts into one bias map;
    factored pool / bilinear matrices; tap-validity masks; bf16 MXU operands."""
    # PPM 1x1 convs: fold BN1 scale into the weights, stack all scales into one block.
    w1_rows, sh1_rows = [], []
    for s in POOL_SCALES:
        p = params["ppm"][s]
        scale1 = p["gamma"] / jnp.sqrt(p["var"] + EPS)
        w1_rows.append((p["w1"] * scale1[None, :]).T)              # (C_OUT, C_IN)
        sh1_rows.append(p["beta"] - p["mean"] * scale1)            # (C_OUT,)
    w1cat = jnp.concatenate(w1_rows, axis=0)                       # (S*C_OUT, C_IN)
    sh1_all = jnp.concatenate(sh1_rows)                            # (S*C_OUT,)

    # Bottleneck 3x3 conv: fold BN2 scale; rows = (tap, out_chan), cols = concat chans.
    scale2 = params["gamma2"] / jnp.sqrt(params["var2"] + EPS)
    w3eff = params["w3"] * scale2[None, None, :]                   # (9, C_TOT, C_OUT)
    w3all = jnp.transpose(w3eff, (0, 2, 1)).reshape(9 * C_OUT, C_TOT)
    sh2 = params["beta2"] - params["mean2"] * scale2               # (C_OUT,)

    # Factored pool / upsample matrices, concatenated over scales at 8-row offsets
    # (zero rows/cols beyond s^2 and beyond HW are harmless -> no in-kernel masking).
    pool_cat = np.zeros((POOL_TOT, HWP), np.float32)
    up_cat = np.zeros((POOL_TOT, HWP), np.float32)
    for i, s in enumerate(POOL_SCALES):
        pool_cat[POOL_OFF[i]:POOL_OFF[i] + s * s, :HW] = _pool_mat_2d(s)
        up_cat[POOL_OFF[i]:POOL_OFF[i] + s * s, :HW] = _upsample_mat_2d(s).T

    masks = _tap_masks()                                           # (9, HWP)

    # Fold the BN1 shifts (constant over pixels; exact since bilinear rows sum to 1)
    # plus the BN2 shift into one (C_OUT, HWP) bias map:
    #   tapconst[t, o] = sum_c w3eff[t, C_IN + c, o] * sh1_all[c]
    #   bias[o, p]     = sh2[o] + sum_t masks[t, p] * tapconst[t, o]
    tapconst = jnp.einsum('tco,c->to', w3eff[:, C_IN:, :], sh1_all)          # (9, C_OUT)
    bias = sh2[:, None] + jnp.einsum('to,tp->op', tapconst, jnp.asarray(masks))

    return {
        "w1cat": w1cat.astype(jnp.bfloat16),                       # (64, C_IN)   bf16
        "pool_cat": jnp.asarray(pool_cat),                         # (72, HWP)    f32
        "up_cat": jnp.asarray(up_cat),                             # (72, HWP)    f32
        "w3all": w3all.astype(jnp.bfloat16),                       # (144, C_TOT) bf16
        "masks": jnp.asarray(masks).reshape(9, 1, HWP),            # (9, 1, HWP)  f32
        "bias": bias.astype(jnp.float32),                          # (C_OUT, HWP) f32
    }


# ---------------- fused Pallas kernel (one batch element per grid step) ----------------
def _psp_head_kernel(x_ref, w1_ref, pool_ref, up_ref, w3_ref, mask_ref, bias_ref,
                     o_ref, cat_ref):
    x = x_ref[0]                                                       # (C_IN, HWP) bf16
    cat_ref[0:C_IN, :] = x                                             # concat scratch

    # All four PPM 1x1 convs (BN1 scale folded) in ONE M=64 MXU matmul.
    y = jnp.dot(w1_ref[...], x, preferred_element_type=jnp.float32)    # (64, HWP) f32

    # Per-scale adaptive-avg-pool + bilinear upsample via factored skinny matmuls (f32).
    for s in range(NUM_SCALES):
        y_s = y[s * C_OUT:(s + 1) * C_OUT, :]                           # (C_OUT, HWP)
        p_s = pool_ref[POOL_OFF[s]:POOL_OFF[s] + POOL_PAD[s], :]        # (n_s, HWP)
        u_s = up_ref[POOL_OFF[s]:POOL_OFF[s] + POOL_PAD[s], :]          # (n_s, HWP)
        pooled = lax.dot_general(y_s, p_s, (((1,), (1,)), ((), ())),    # (C_OUT, n_s)
                                 preferred_element_type=jnp.float32)
        branch = jnp.dot(pooled, u_s, preferred_element_type=jnp.float32)  # (C_OUT, HWP)
        cat_ref[C_IN + s * C_OUT:C_IN + (s + 1) * C_OUT, :] = branch.astype(cat_ref.dtype)

    # 3x3 bottleneck channel contraction: ONE K=C_TOT=96 bf16 matmul (BN2 scale folded).
    z = jnp.dot(w3_ref[...], cat_ref[...], preferred_element_type=jnp.float32)  # (144, HWP)

    # Spatial part of the 3x3 conv: each tap is a lane roll (XLU) + boundary mask (VPU).
    acc = z[4 * C_OUT:5 * C_OUT, :]                                     # center tap
    for t in range(9):
        if t == 4:
            continue
        delta = (t // 3 - 1) * W + (t % 3 - 1)
        rolled = pltpu.roll(z[t * C_OUT:(t + 1) * C_OUT, :], (-delta) % HWP, axis=1)
        acc = acc + rolled * mask_ref[t]

    # Folded BN shifts (BN1 pushed through the masks + BN2) as one precomputed bias map.
    o_ref[0] = (acc + bias_ref[...]).astype(o_ref.dtype)


def psp_head_forward(x_nchw, ops):
    # Free reshape to (B, C_IN, HW); zero-pad the spatial axis to a lane-dense 256 and
    # cast the activation to bf16 for the MXU.
    xb = x_nchw.reshape(B, C_IN, HW).astype(jnp.bfloat16)
    x_pad = jnp.pad(xb, ((0, 0), (0, 0), (0, HWP - HW)))
    out = pl.pallas_call(
        _psp_head_kernel,
        out_shape=jax.ShapeDtypeStruct((B, C_OUT, HWP), jnp.float32),
        grid=(B,),
        in_specs=[
            pl.BlockSpec((1, C_IN, HWP), lambda b: (b, 0, 0)),
            # grid-invariant weights (whole-array blocks; see TODO about Buffered(1)
            # single-buffering at production sizes)
            pl.BlockSpec((NUM_SCALES * C_OUT, C_IN), lambda b: (0, 0)),
            pl.BlockSpec((POOL_TOT, HWP), lambda b: (0, 0)),
            pl.BlockSpec((POOL_TOT, HWP), lambda b: (0, 0)),
            pl.BlockSpec((9 * C_OUT, C_TOT), lambda b: (0, 0)),
            pl.BlockSpec((9, 1, HWP), lambda b: (0, 0, 0)),
            pl.BlockSpec((C_OUT, HWP), lambda b: (0, 0)),
        ],
        out_specs=pl.BlockSpec((1, C_OUT, HWP), lambda b: (b, 0, 0)),
        scratch_shapes=[pltpu.VMEM((C_TOT, HWP), jnp.bfloat16)],
        compiler_params=pltpu.CompilerParams(
            dimension_semantics=("parallel",),        # v7x: one batch element per TC
            vmem_limit_bytes=16 * 1024 * 1024),
    )(x_pad, ops["w1cat"], ops["pool_cat"], ops["up_cat"], ops["w3all"],
      ops["masks"], ops["bias"])
    # Drop the lane padding; free reshape back to NCHW.
    return out[:, :, :HW].reshape(B, C_OUT, H, W)


# ---------------- plain-JAX f32 reference (unfused, unfolded params) ----------------
def reference_forward(x_nchw, params):
    xf = x_nchw.reshape(B, C_IN, HW)
    branches = [xf]
    for s in POOL_SCALES:
        p = params["ppm"][s]
        pmat = jnp.asarray(_pool_mat_2d(s))
        umat = jnp.asarray(_upsample_mat_2d(s))
        pooled = jnp.einsum('ji,bci->bcj', pmat, xf)
        conv = jnp.einsum('co,bcj->boj', p["w1"], pooled)
        scale = p["gamma"] / jnp.sqrt(p["var"] + EPS)
        shift = p["beta"] - p["mean"] * scale
        bn = conv * scale[None, :, None] + shift[None, :, None]
        branches.append(jnp.einsum('qj,boj->boq', umat, bn))
    cat = jnp.concatenate(branches, axis=1).reshape(B, C_TOT, H, W)
    xp = jnp.pad(cat, ((0, 0), (0, 0), (1, 1), (1, 1)))
    acc = jnp.zeros((B, C_OUT, H, W), jnp.float32)
    for t in range(9):
        dy, dx = t // 3, t % 3
        acc = acc + jnp.einsum('co,bchw->bohw', params["w3"][t],
                               xp[:, :, dy:dy + H, dx:dx + W])
    scale2 = params["gamma2"] / jnp.sqrt(params["var2"] + EPS)
    shift2 = params["beta2"] - params["mean2"] * scale2
    return acc * scale2[None, :, None, None] + shift2[None, :, None, None]


if __name__ == "__main__":
    key = jax.random.PRNGKey(0)
    pkey, xkey = jax.random.split(key)
    params = init_params(pkey)
    ops = prepare_kernel_operands(params)
    x = jax.random.normal(xkey, (B, C_IN, H, W), jnp.float32)    # NCHW like PyTorch

    out = jax.block_until_ready(psp_head_forward(x, ops))
    ref = reference_forward(x, params)

    assert out.shape == (B, C_OUT, H, W), out.shape
    max_err = float(jnp.max(jnp.abs(out - ref)))
    # bf16 MXU operands (f32 accumulation) -> relaxed tolerance vs the f32 reference.
    assert max_err < 2e-2, f"mismatch vs reference: {max_err}"
    print("KERNEL_OK")
</pallas_src>

<mosaic_0001>
module attributes {stable_mosaic.version = 11 : i64} {
  func.func @_psp_head_kernel(%arg0: i32, %arg1: memref<1x32x256xbf16, #tpu.memory_space<vmem>>, %arg2: memref<64x32xbf16, #tpu.memory_space<vmem>>, %arg3: memref<72x256xf32, #tpu.memory_space<vmem>>, %arg4: memref<72x256xf32, #tpu.memory_space<vmem>>, %arg5: memref<144x96xbf16, #tpu.memory_space<vmem>>, %arg6: memref<9x1x256xf32, #tpu.memory_space<vmem>>, %arg7: memref<16x256xf32, #tpu.memory_space<vmem>>, %arg8: memref<1x16x256xf32, #tpu.memory_space<vmem>>, %arg9: memref<96x256xbf16, #tpu.memory_space<vmem>>) attributes {dimension_semantics = [#tpu.dimension_semantics<parallel>], iteration_bounds = array<i64: 2>, scalar_prefetch = 0 : i64, scratch_operands = 1 : i64, tpu.core_type = #tpu.core_type<tc>, window_params = [{transform_indices = @transform_0, window_bounds = array<i64: 1, 32, 256>}, {pipeline_mode = #tpu.pipeline_mode<synchronous>, transform_indices = @transform_1, window_bounds = array<i64: 64, 32>}, {pipeline_mode = #tpu.pipeline_mode<synchronous>, transform_indices = @transform_2, window_bounds = array<i64: 72, 256>}, {pipeline_mode = #tpu.pipeline_mode<synchronous>, transform_indices = @transform_3, window_bounds = array<i64: 72, 256>}, {pipeline_mode = #tpu.pipeline_mode<synchronous>, transform_indices = @transform_4, window_bounds = array<i64: 144, 96>}, {pipeline_mode = #tpu.pipeline_mode<synchronous>, transform_indices = @transform_5, window_bounds = array<i64: 9, 1, 256>}, {pipeline_mode = #tpu.pipeline_mode<synchronous>, transform_indices = @transform_6, window_bounds = array<i64: 16, 256>}, {transform_indices = @transform_7, window_bounds = array<i64: 1, 16, 256>}]} {
    %c0 = arith.constant 0 : index
    %c0_0 = arith.constant 0 : index
    %c0_1 = arith.constant 0 : index
    %0 = vector.load %arg1[%c0, %c0_0, %c0_1] : memref<1x32x256xbf16, #tpu.memory_space<vmem>>, vector<1x32x256xbf16>
    %1 = vector.shape_cast %0 : vector<1x32x256xbf16> to vector<32x256xbf16>
    %c0_2 = arith.constant 0 : index
    %c0_3 = arith.constant 0 : index
    %2 = vector.load %arg9[%c0_2, %c0_3] : memref<96x256xbf16, #tpu.memory_space<vmem>>, vector<32x256xbf16>
    tpu.vector_store %arg9[%c0_2, %c0_3], %1 {strides = array<i32>} : memref<96x256xbf16, #tpu.memory_space<vmem>>, vector<32x256xbf16>,
    %c0_4 = arith.constant 0 : index
    %c0_5 = arith.constant 0 : index
    %3 = vector.load %arg2[%c0_4, %c0_5] : memref<64x32xbf16, #tpu.memory_space<vmem>>, vector<64x32xbf16>
    %cst = arith.constant dense<0.000000e+00> : vector<64x256xf32>
    %4 = tpu.matmul %3, %1, %cst {dimension_numbers = #tpu.dot_dimension_numbers<[1], [0], [0], [1], [0, 0, 1, 1], [], []>} : vector<64x32xbf16>, vector<32x256xbf16>, vector<64x256xf32> -> vector<64x256xf32>
    %5 = vector.extract_strided_slice %4 {offsets = [0, 0], sizes = [16, 256], strides = [1, 1]} : vector<64x256xf32> to vector<16x256xf32>
    %c0_6 = arith.constant 0 : index
    %c0_7 = arith.constant 0 : index
    %6 = vector.load %arg3[%c0_6, %c0_7] : memref<72x256xf32, #tpu.memory_space<vmem>>, vector<8x256xf32>
    %c0_8 = arith.constant 0 : index
    %c0_9 = arith.constant 0 : index
    %7 = vector.load %arg4[%c0_8, %c0_9] : memref<72x256xf32, #tpu.memory_space<vmem>>, vector<8x256xf32>
    %cst_10 = arith.constant dense<0.000000e+00> : vector<16x8xf32>
    %8 = tpu.matmul %5, %6, %cst_10 {dimension_numbers = #tpu.dot_dimension_numbers<[1], [1], [0], [0], [0, 0, 1, 0], [], []>} : vector<16x256xf32>, vector<8x256xf32>, vector<16x8xf32> -> vector<16x8xf32>
    %cst_11 = arith.constant dense<0.000000e+00> : vector<16x256xf32>
    %9 = tpu.matmul %8, %7, %cst_11 {dimension_numbers = #tpu.dot_dimension_numbers<[1], [0], [0], [1], [0, 0, 1, 1], [], []>} : vector<16x8xf32>, vector<8x256xf32>, vector<16x256xf32> -> vector<16x256xf32>
    %10 = arith.truncf %9 : vector<16x256xf32> to vector<16x256xbf16>
    %c32 = arith.constant 32 : index
    %c0_12 = arith.constant 0 : index
    %11 = vector.load %arg9[%c32, %c0_12] : memref<96x256xbf16, #tpu.memory_space<vmem>>, vector<16x256xbf16>
    tpu.vector_store %arg9[%c32, %c0_12], %10 {strides = array<i32>} : memref<96x256xbf16, #tpu.memory_space<vmem>>, vector<16x256xbf16>,
    %12 = vector.extract_strided_slice %4 {offsets = [16, 0], sizes = [16, 256], strides = [1, 1]} : vector<64x256xf32> to vector<16x256xf32>
    %c8 = arith.constant 8 : index
    %c0_13 = arith.constant 0 : index
    %13 = vector.load %arg3[%c8, %c0_13] : memref<72x256xf32, #tpu.memory_space<vmem>>, vector<8x256xf32>
    %c8_14 = arith.constant 8 : index
    %c0_15 = arith.constant 0 : index
    %14 = vector.load %arg4[%c8_14, %c0_15] : memref<72x256xf32, #tpu.memory_space<vmem>>, vector<8x256xf32>
    %cst_16 = arith.constant dense<0.000000e+00> : vector<16x8xf32>
    %15 = tpu.matmul %12, %13, %cst_16 {dimension_numbers = #tpu.dot_dimension_numbers<[1], [1], [0], [0], [0, 0, 1, 0], [], []>} : vector<16x256xf32>, vector<8x256xf32>, vector<16x8xf32> -> vector<16x8xf32>
    %cst_17 = arith.constant dense<0.000000e+00> : vector<16x256xf32>
    %16 = tpu.matmul %15, %14, %cst_17 {dimension_numbers = #tpu.dot_dimension_numbers<[1], [0], [0], [1], [0, 0, 1, 1], [], []>} : vector<16x8xf32>, vector<8x256xf32>, vector<16x256xf32> -> vector<16x256xf32>
    %17 = arith.truncf %16 : vector<16x256xf32> to vector<16x256xbf16>
    %c48 = arith.constant 48 : index
    %c0_18 = arith.constant 0 : index
    %18 = vector.load %arg9[%c48, %c0_18] : memref<96x256xbf16, #tpu.memory_space<vmem>>, vector<16x256xbf16>
    tpu.vector_store %arg9[%c48, %c0_18], %17 {strides = array<i32>} : memref<96x256xbf16, #tpu.memory_space<vmem>>, vector<16x256xbf16>,
    %19 = vector.extract_strided_slice %4 {offsets = [32, 0], sizes = [16, 256], strides = [1, 1]} : vector<64x256xf32> to vector<16x256xf32>
    %c16 = arith.constant 16 : index
    %c0_19 = arith.constant 0 : index
    %20 = vector.load %arg3[%c16, %c0_19] : memref<72x256xf32, #tpu.memory_space<vmem>>, vector<16x256xf32>
    %c16_20 = arith.constant 16 : index
    %c0_21 = arith.constant 0 : index
    %21 = vector.load %arg4[%c16_20, %c0_21] : memref<72x256xf32, #tpu.memory_space<vmem>>, vector<16x256xf32>
    %cst_22 = arith.constant dense<0.000000e+00> : vector<16x16xf32>
    %22 = tpu.matmul %19, %20, %cst_22 {dimension_numbers = #tpu.dot_dimension_numbers<[1], [1], [0], [0], [0, 0, 1, 0], [], []>} : vector<16x256xf32>, vector<16x256xf32>, vector<16x16xf32> -> vector<16x16xf32>
    %cst_23 = arith.constant dense<0.000000e+00> : vector<16x256xf32>
    %23 = tpu.matmul %22, %21, %cst_23 {dimension_numbers = #tpu.dot_dimension_numbers<[1], [0], [0], [1], [0, 0, 1, 1], [], []>} : vector<16x16xf32>, vector<16x256xf32>, vector<16x256xf32> -> vector<16x256xf32>
    %24 = arith.truncf %23 : vector<16x256xf32> to vector<16x256xbf16>
    %c64 = arith.constant 64 : index
    %c0_24 = arith.constant 0 : index
    %25 = vector.load %arg9[%c64, %c0_24] : memref<96x256xbf16, #tpu.memory_space<vmem>>, vector<16x256xbf16>
    tpu.vector_store %arg9[%c64, %c0_24], %24 {strides = array<i32>} : memref<96x256xbf16, #tpu.memory_space<vmem>>, vector<16x256xbf16>,
    %26 = vector.extract_strided_slice %4 {offsets = [48, 0], sizes = [16, 256], strides = [1, 1]} : vector<64x256xf32> to vector<16x256xf32>
    %c32_25 = arith.constant 32 : index
    %c0_26 = arith.constant 0 : index
    %27 = vector.load %arg3[%c32_25, %c0_26] : memref<72x256xf32, #tpu.memory_space<vmem>>, vector<40x256xf32>
    %c32_27 = arith.constant 32 : index
    %c0_28 = arith.constant 0 : index
    %28 = vector.load %arg4[%c32_27, %c0_28] : memref<72x256xf32, #tpu.memory_space<vmem>>, vector<40x256xf32>
    %cst_29 = arith.constant dense<0.000000e+00> : vector<16x40xf32>
    %29 = tpu.matmul %26, %27, %cst_29 {dimension_numbers = #tpu.dot_dimension_numbers<[1], [1], [0], [0], [0, 0, 1, 0], [], []>} : vector<16x256xf32>, vector<40x256xf32>, vector<16x40xf32> -> vector<16x40xf32>
    %cst_30 = arith.constant dense<0.000000e+00> : vector<16x256xf32>
    %30 = tpu.matmul %29, %28, %cst_30 {dimension_numbers = #tpu.dot_dimension_numbers<[1], [0], [0], [1], [0, 0, 1, 1], [], []>} : vector<16x40xf32>, vector<40x256xf32>, vector<16x256xf32> -> vector<16x256xf32>
    %31 = arith.truncf %30 : vector<16x256xf32> to vector<16x256xbf16>
    %c80 = arith.constant 80 : index
    %c0_31 = arith.constant 0 : index
    %32 = vector.load %arg9[%c80, %c0_31] : memref<96x256xbf16, #tpu.memory_space<vmem>>, vector<16x256xbf16>
    tpu.vector_store %arg9[%c80, %c0_31], %31 {strides = array<i32>} : memref<96x256xbf16, #tpu.memory_space<vmem>>, vector<16x256xbf16>,
    %c0_32 = arith.constant 0 : index
    %c0_33 = arith.constant 0 : index
    %33 = vector.load %arg5[%c0_32, %c0_33] : memref<144x96xbf16, #tpu.memory_space<vmem>>, vector<144x96xbf16>
    %c0_34 = arith.constant 0 : index
    %c0_35 = arith.constant 0 : index
    %34 = vector.load %arg9[%c0_34, %c0_35] : memref<96x256xbf16, #tpu.memory_space<vmem>>, vector<96x256xbf16>
    %cst_36 = arith.constant dense<0.000000e+00> : vector<144x256xf32>
    %35 = tpu.matmul %33, %34, %cst_36 {dimension_numbers = #tpu.dot_dimension_numbers<[1], [0], [0], [1], [0, 0, 1, 1], [], []>} : vector<144x96xbf16>, vector<96x256xbf16>, vector<144x256xf32> -> vector<144x256xf32>
    %36 = vector.extract_strided_slice %35 {offsets = [64, 0], sizes = [16, 256], strides = [1, 1]} : vector<144x256xf32> to vector<16x256xf32>
    %37 = vector.extract_strided_slice %35 {offsets = [0, 0], sizes = [16, 256], strides = [1, 1]} : vector<144x256xf32> to vector<16x256xf32>
    %c13_i32 = arith.constant 13 : i32
    %38 = tpu.dynamic_rotate %37 by %c13_i32 dim 1 : vector<16x256xf32>, i32 -> vector<16x256xf32>
    %c0_37 = arith.constant 0 : index
    %c0_38 = arith.constant 0 : index
    %c0_39 = arith.constant 0 : index
    %39 = vector.load %arg6[%c0_37, %c0_38, %c0_39] : memref<9x1x256xf32, #tpu.memory_space<vmem>>, vector<1x1x256xf32>
    %40 = vector.shape_cast %39 : vector<1x1x256xf32> to vector<1x256xf32>
    %41 = vector.broadcast %40 : vector<1x256xf32> to vector<16x256xf32>
    %42 = arith.mulf %38, %41 : vector<16x256xf32>
    %43 = arith.addf %36, %42 : vector<16x256xf32>
    %44 = vector.extract_strided_slice %35 {offsets = [16, 0], sizes = [16, 256], strides = [1, 1]} : vector<144x256xf32> to vector<16x256xf32>
    %c12_i32 = arith.constant 12 : i32
    %45 = tpu.dynamic_rotate %44 by %c12_i32 dim 1 : vector<16x256xf32>, i32 -> vector<16x256xf32>
    %c1 = arith.constant 1 : index
    %c0_40 = arith.constant 0 : index
    %c0_41 = arith.constant 0 : index
    %46 = vector.load %arg6[%c1, %c0_40, %c0_41] : memref<9x1x256xf32, #tpu.memory_space<vmem>>, vector<1x1x256xf32>
    %47 = vector.shape_cast %46 : vector<1x1x256xf32> to vector<1x256xf32>
    %48 = vector.broadcast %47 : vector<1x256xf32> to vector<16x256xf32>
    %49 = arith.mulf %45, %48 : vector<16x256xf32>
    %50 = arith.addf %43, %49 : vector<16x256xf32>
    %51 = vector.extract_strided_slice %35 {offsets = [32, 0], sizes = [16, 256], strides = [1, 1]} : vector<144x256xf32> to vector<16x256xf32>
    %c11_i32 = arith.constant 11 : i32
    %52 = tpu.dynamic_rotate %51 by %c11_i32 dim 1 : vector<16x256xf32>, i32 -> vector<16x256xf32>
    %c2 = arith.constant 2 : index
    %c0_42 = arith.constant 0 : index
    %c0_43 = arith.constant 0 : index
    %53 = vector.load %arg6[%c2, %c0_42, %c0_43] : memref<9x1x256xf32, #tpu.memory_space<vmem>>, vector<1x1x256xf32>
    %54 = vector.shape_cast %53 : vector<1x1x256xf32> to vector<1x256xf32>
    %55 = vector.broadcast %54 : vector<1x256xf32> to vector<16x256xf32>
    %56 = arith.mulf %52, %55 : vector<16x256xf32>
    %57 = arith.addf %50, %56 : vector<16x256xf32>
    %58 = vector.extract_strided_slice %35 {offsets = [48, 0], sizes = [16, 256], strides = [1, 1]} : vector<144x256xf32> to vector<16x256xf32>
    %c1_i32 = arith.constant 1 : i32
    %59 = tpu.dynamic_rotate %58 by %c1_i32 dim 1 : vector<16x256xf32>, i32 -> vector<16x256xf32>
    %c3 = arith.constant 3 : index
    %c0_44 = arith.constant 0 : index
    %c0_45 = arith.constant 0 : index
    %60 = vector.load %arg6[%c3, %c0_44, %c0_45] : memref<9x1x256xf32, #tpu.memory_space<vmem>>, vector<1x1x256xf32>
    %61 = vector.shape_cast %60 : vector<1x1x256xf32> to vector<1x256xf32>
    %62 = vector.broadcast %61 : vector<1x256xf32> to vector<16x256xf32>
    %63 = arith.mulf %59, %62 : vector<16x256xf32>
    %64 = arith.addf %57, %63 : vector<16x256xf32>
    %65 = vector.extract_strided_slice %35 {offsets = [80, 0], sizes = [16, 256], strides = [1, 1]} : vector<144x256xf32> to vector<16x256xf32>
    %c255_i32 = arith.constant 255 : i32
    %66 = tpu.dynamic_rotate %65 by %c255_i32 dim 1 : vector<16x256xf32>, i32 -> vector<16x256xf32>
    %c5 = arith.constant 5 : index
    %c0_46 = arith.constant 0 : index
    %c0_47 = arith.constant 0 : index
    %67 = vector.load %arg6[%c5, %c0_46, %c0_47] : memref<9x1x256xf32, #tpu.memory_space<vmem>>, vector<1x1x256xf32>
    %68 = vector.shape_cast %67 : vector<1x1x256xf32> to vector<1x256xf32>
    %69 = vector.broadcast %68 : vector<1x256xf32> to vector<16x256xf32>
    %70 = arith.mulf %66, %69 : vector<16x256xf32>
    %71 = arith.addf %64, %70 : vector<16x256xf32>
    %72 = vector.extract_strided_slice %35 {offsets = [96, 0], sizes = [16, 256], strides = [1, 1]} : vector<144x256xf32> to vector<16x256xf32>
    %c245_i32 = arith.constant 245 : i32
    %73 = tpu.dynamic_rotate %72 by %c245_i32 dim 1 : vector<16x256xf32>, i32 -> vector<16x256xf32>
    %c6 = arith.constant 6 : index
    %c0_48 = arith.constant 0 : index
    %c0_49 = arith.constant 0 : index
    %74 = vector.load %arg6[%c6, %c0_48, %c0_49] : memref<9x1x256xf32, #tpu.memory_space<vmem>>, vector<1x1x256xf32>
    %75 = vector.shape_cast %74 : vector<1x1x256xf32> to vector<1x256xf32>
    %76 = vector.broadcast %75 : vector<1x256xf32> to vector<16x256xf32>
    %77 = arith.mulf %73, %76 : vector<16x256xf32>
    %78 = arith.addf %71, %77 : vector<16x256xf32>
    %79 = vector.extract_strided_slice %35 {offsets = [112, 0], sizes = [16, 256], strides = [1, 1]} : vector<144x256xf32> to vector<16x256xf32>
    %c244_i32 = arith.constant 244 : i32
    %80 = tpu.dynamic_rotate %79 by %c244_i32 dim 1 : vector<16x256xf32>, i32 -> vector<16x256xf32>
    %c7 = arith.constant 7 : index
    %c0_50 = arith.constant 0 : index
    %c0_51 = arith.constant 0 : index
    %81 = vector.load %arg6[%c7, %c0_50, %c0_51] : memref<9x1x256xf32, #tpu.memory_space<vmem>>, vector<1x1x256xf32>
    %82 = vector.shape_cast %81 : vector<1x1x256xf32> to vector<1x256xf32>
    %83 = vector.broadcast %82 : vector<1x256xf32> to vector<16x256xf32>
    %84 = arith.mulf %80, %83 : vector<16x256xf32>
    %85 = arith.addf %78, %84 : vector<16x256xf32>
    %86 = vector.extract_strided_slice %35 {offsets = [128, 0], sizes = [16, 256], strides = [1, 1]} : vector<144x256xf32> to vector<16x256xf32>
    %c243_i32 = arith.constant 243 : i32
    %87 = tpu.dynamic_rotate %86 by %c243_i32 dim 1 : vector<16x256xf32>, i32 -> vector<16x256xf32>
    %c8_52 = arith.constant 8 : index
    %c0_53 = arith.constant 0 : index
    %c0_54 = arith.constant 0 : index
    %88 = vector.load %arg6[%c8_52, %c0_53, %c0_54] : memref<9x1x256xf32, #tpu.memory_space<vmem>>, vector<1x1x256xf32>
    %89 = vector.shape_cast %88 : vector<1x1x256xf32> to vector<1x256xf32>
    %90 = vector.broadcast %89 : vector<1x256xf32> to vector<16x256xf32>
    %91 = arith.mulf %87, %90 : vector<16x256xf32>
    %92 = arith.addf %85, %91 : vector<16x256xf32>
    %c0_55 = arith.constant 0 : index
    %c0_56 = arith.constant 0 : index
    %93 = vector.load %arg7[%c0_55, %c0_56] : memref<16x256xf32, #tpu.memory_space<vmem>>, vector<16x256xf32>
    %94 = arith.addf %92, %93 : vector<16x256xf32>
    %c0_57 = arith.constant 0 : index
    %c0_58 = arith.constant 0 : index
    %c0_59 = arith.constant 0 : index
    %95 = vector.load %arg8[%c0_57, %c0_58, %c0_59] : memref<1x16x256xf32, #tpu.memory_space<vmem>>, vector<1x16x256xf32>
    %96 = vector.shape_cast %95 : vector<1x16x256xf32> to vector<16x256xf32>
    %97 = vector.shape_cast %94 : vector<16x256xf32> to vector<1x16x256xf32>
    tpu.vector_store %arg8[%c0_57, %c0_58, %c0_59], %97 {strides = array<i32>} : memref<1x16x256xf32, #tpu.memory_space<vmem>>, vector<1x16x256xf32>,
    return
  }
  func.func @transform_0(%arg0: i32) -> (i32, i32, i32) {
    %c0_i32 = arith.constant 0 : i32
    %c0_i32_0 = arith.constant 0 : i32
    %c0_i32_1 = arith.constant 0 : i32
    return %arg0, %c0_i32, %c0_i32_0 : i32, i32, i32
  }
  func.func @transform_1(%arg0: i32) -> (i32, i32) {
    %c0_i32 = arith.constant 0 : i32
    %c0_i32_0 = arith.constant 0 : i32
    %c0_i32_1 = arith.constant 0 : i32
    return %c0_i32, %c0_i32_0 : i32, i32
  }
  func.func @transform_2(%arg0: i32) -> (i32, i32) {
    %c0_i32 = arith.constant 0 : i32
    %c0_i32_0 = arith.constant 0 : i32
    %c0_i32_1 = arith.constant 0 : i32
    return %c0_i32, %c0_i32_0 : i32, i32
  }
  func.func @transform_3(%arg0: i32) -> (i32, i32) {
    %c0_i32 = arith.constant 0 : i32
    %c0_i32_0 = arith.constant 0 : i32
    %c0_i32_1 = arith.constant 0 : i32
    return %c0_i32, %c0_i32_0 : i32, i32
  }
  func.func @transform_4(%arg0: i32) -> (i32, i32) {
    %c0_i32 = arith.constant 0 : i32
    %c0_i32_0 = arith.constant 0 : i32
    %c0_i32_1 = arith.constant 0 : i32
    return %c0_i32, %c0_i32_0 : i32, i32
  }
  func.func @transform_5(%arg0: i32) -> (i32, i32, i32) {
    %c0_i32 = arith.constant 0 : i32
    %c0_i32_0 = arith.constant 0 : i32
    %c0_i32_1 = arith.constant 0 : i32
    %c0_i32_2 = arith.constant 0 : i32
    return %c0_i32, %c0_i32_0, %c0_i32_1 : i32, i32, i32
  }
  func.func @transform_6(%arg0: i32) -> (i32, i32) {
    %c0_i32 = arith.constant 0 : i32
    %c0_i32_0 = arith.constant 0 : i32
    %c0_i32_1 = arith.constant 0 : i32
    return %c0_i32, %c0_i32_0 : i32, i32
  }
  func.func @transform_7(%arg0: i32) -> (i32, i32, i32) {
    %c0_i32 = arith.constant 0 : i32
    %c0_i32_0 = arith.constant 0 : i32
    %c0_i32_1 = arith.constant 0 : i32
    return %arg0, %c0_i32, %c0_i32_0 : i32, i32, i32
  }
}

</mosaic_0001>

<bundles_post_ra>
// kernel: tpu_custom_call.1
= control target key start
LH: loop header
LB: loop body
LE: loop exit
PB: predicated region body
PF: predicated region fallthrough
CT: control target
= control target key end

     0   :  { %s2874_s0 = inlined_call_operand.hbm [shape: bf16[2,32,256], index: 0, kind: input, shape index: {}]   ;;  %s2875_s1 = inlined_call_operand.vmem [shape: bf16[64,32], index: 1, kind: input, shape index: {}]   ;;  %s2876_s2 = inlined_call_operand.hbm [shape: f32[72,256], index: 2, kind: input, shape index: {}]   ;;  %s2877_s3 = inlined_call_operand.hbm [shape: f32[72,256], index: 3, kind: input, shape index: {}]   ;;  %s2878_s4 = inlined_call_operand.hbm [shape: bf16[144,96], index: 4, kind: input, shape index: {}]   ;;  %s2879_s5 = inlined_call_operand.vmem [shape: f32[9,1,256], index: 5, kind: input, shape index: {}]   ;;  %s2880_s6 = inlined_call_operand.vmem [shape: f32[16,256], index: 6, kind: input, shape index: {}]   ;;  %s2881_s7 = inlined_call_operand.hbm [shape: f32[2,16,256], index: 7, kind: output, shape index: {}]  }
   0x1   :  { %2886 = sst [smem:[#allocation16_spill]] %s2876_s2 }
   0x2   :  { %12 = vsyncpa [#allocation4], 0 }
   0x3   :  { %14 = vsyncpa [#allocation4 + $0x1], 0 }
   0x4   :  { %15 = vsyncpa [#allocation7], 0 }
   0x5   :  { %16 = vsyncpa [#allocation10], 0 }
   0x6   :  { %17 = vsyncpa [#allocation5], 0 }
   0x7   :  { %19 = vsyncpa [#allocation5 + $0x1], 0  ;;  %s2358_s24 = smov 0   ;;  %s2360_s25 = smov 0  }
   0x8   :  { %s2362_s26 = smov 0   ;;  %s2364_s27 = smov 0  }
   0x9 LB: > { %s2379_s28 = sadd.s32 4294967295, %s2293_s27   ;;  %s1898_s29 = sadd.s32 4294967294, %s2293_s27   ;;  %s2293_s27 = sphi %s2364_s27, %s2907_s27   ;;  %s2289_s26 = sphi %s2362_s26, %s2906_s26   ;;  %s2285_s25 = sphi %s2360_s25, %s2905_s25   ;;  %s2281_s24 = sphi %s2358_s24, %s2904_s24  }
   0xa   : > { %p45_p0 = scmp.ne.s32.totalorder %s2285_s25, %s2281_s24  ;;  %p2882_p1 = scmp.eq.s32.totalorder %s2379_s28, 0 }
   0xb   : > { %p201_p3 = scmp.eq.s32.totalorder %s1898_s29, 1  ;;  %p1899_p5 = scmp.ge.s32.totalorder %s2293_s27, 1 }
   0xc   : > { %p2388_p4 = por %p2882_p1, %p45_p0  ;;  %p208_p7 = scmp.lt.s32.totalorder %s2293_s27, 3 }
   0xd   : > { %p2393_p6 = por %p201_p3, %p45_p0  ;;  %s2295_s10 = smov [#allocation6]  }
   0xe   : > { %s2887_s30 = scalar_select %p2388_p4, 1, 0 }
   0xf   : > { %s2888_s8 = scalar_select %p2393_p6, 1, 0 }
  0x10   : > { %p2398_p8 = pnand %p1899_p5, %p208_p7  ;;  %s223_s11 = sshll.u32 %s2295_s10, 4  ;;  %s224_s11 = int_to_ptr.vmem [resolvable:$true] %s223_s11 }
  0x11   : > { %s2296_s13 = smov [#allocation8]   ;;  %s2297_s15 = smov [#allocation9]  }
  0x12   : > { %s2889_s9 = scalar_select %p2398_p8, 1, 0 }
  0x13   : > { %p2017_p9 = pneg %p2398_p8  ;;  %s236_s14 = sshll.u32 %s2296_s13, 4  ;;  %s237_s14 = int_to_ptr.vmem [resolvable:$true] %s236_s14 }
  0x14   : > { %s249_s16 = sshll.u32 %s2297_s15, 4  ;;  %s2126_s17 = scalar_lea.vmem %s224_s11, 2304  ;;  %s250_s16 = int_to_ptr.vmem [resolvable:$true] %s249_s16 }
  0x15   : > { %p2407_p11 = pnand %p2017_p9, %p2882_p1  ;;  %p2127_p13 = scmp.ne.s32.totalorder %s224_s11, %s2126_s17 }
  0x16   : > { %p2134_p5 = scmp.lt.s32.totalorder %s224_s11, %s224_s11  ;;  %p2135_p7 = scmp.lt.s32.totalorder %s2126_s17, %s2126_s17 }
  0x17   : > { %p2117_p12 = pneg %p2407_p11 }
  0x18   : > { %p2136_p9 = por %p2135_p7, %p2134_p5 }
  0x19   : > { %p2129_p0 = pnand %p2127_p13, %p2117_p12 }
  0x1b   : > { %p2130_p3 = pneg %p2129_p0 }
  0x1d   : > { %p2137_p10 = pnand %p2136_p9, %p2130_p3 }
  0x1f   : > { %2140 = shalt.err (!%p2137_p10)
}
  0x20   : > { %s2298_s18 = smov 256   ;;  %s2299_s19 = smov 16  }
  0x21   : > { %s2891_s2 = sld [smem:[#allocation16_spill]]  ;;  %s2152_s22 = scalar_lea.vmem %s237_s14, 2304 }
  0x22   : > { %p2153_p1 = scmp.ne.s32.totalorder %s237_s14, %s2152_s22  ;;  %p2160_p2 = scmp.lt.s32.totalorder %s237_s14, %s237_s14 }
  0x23   : > { %p2161_p6 = scmp.lt.s32.totalorder %s2152_s22, %s2152_s22 }
  0x24   : > { %p2155_p13 = pnand %p2153_p1, %p2117_p12 }
  0x25   : > { %p2162_p5 = por %p2161_p6, %p2160_p2 }
  0x26   : > { %p2156_p0 = pneg %p2155_p13 }
  0x27   : > { %2020 = dma.hbm_to_vmem [thread:$0]  (!%p2407_p11), %s2891_s2, 2304, %s224_s11, [#allocation7], %s2298_s18, %s2298_s18, %s2299_s19  }
  0x28   : > { %p2163_p3 = pnand %p2162_p5, %p2156_p0 }
  0x2a   : > { %2166 = shalt.err (!%p2163_p3)
}
  0x2b   : > { %2023 = dma.hbm_to_vmem [thread:$0]  (!%p2407_p11), %s2877_s3, 2304, %s237_s14, [#allocation7], %s2298_s18, %s2298_s18, %s2299_s19  }
  0x2c   : > { %s2178_s10 = scalar_lea.vmem %s250_s16, 1152  ;;  %p2186_p9 = scmp.lt.s32.totalorder %s250_s16, %s250_s16 }
  0x2d   : > { %p2179_p10 = scmp.ne.s32.totalorder %s250_s16, %s2178_s10  ;;  %p2187_p13 = scmp.lt.s32.totalorder %s2178_s10, %s2178_s10 }
  0x2f   : > { %p2181_p7 = pnand %p2179_p10, %p2117_p12  ;;  %p2188_p4 = por %p2187_p13, %p2186_p9 }
  0x31   : > { %p2182_p1 = pneg %p2181_p7 }
  0x33   : > { %p2189_p2 = pnand %p2188_p4, %p2182_p1 }
  0x35   : > { %2192 = shalt.err (!%p2189_p2)
}
  0x36   : > { %s2300_s11 = smov 64   ;;  %s2301_s13 = smov 4  }
  0x37   : > { %2026 = dma.hbm_to_vmem [thread:$0]  (!%p2407_p11), %s2878_s4, 1152, %s250_s16, [#allocation10], %s2300_s11, %s2300_s11, %s2301_s13  }
  0x38   : > { %s2438_s17 = sadd.s32 1, %s2293_s27   ;;  %s32_s19 = sadd.s32 1, %s2289_s26 }
  0x39   : > { %s29_s18 = ssub.s32 %s2293_s27, %s2438_s17  ;;  %p39_p6 = scmp.ne.s32.totalorder %s2289_s26, %s2285_s25 }
  0x3a   : > { %p30_p4 = scmp.eq.s32.totalorder %s29_s18, 0  ;;  %p40_p12 = scmp.eq.s32.totalorder %s2293_s27, 0 }
  0x3b   : > { %p2038_p0 = scmp.lt.s32.totalorder %s2293_s27, 2  ;;  %p2892_p3 = scmp.eq.s32.totalorder %s2379_s28, 1 }
  0x3c   : > { %s2448_s20 = scalar_select %p30_p4, %s2289_s26, %s32_s19  }
  0x3d   : > { %p41_p5 = por %p40_p12, %p39_p6  ;;  %p2452_p10 = por %p2892_p3, %p39_p6 }
  0x3e   : > { %s269_s12 = sand.u32 1, %s2289_s26   ;;  %s1983_s22 = sshll.u32 %s2293_s27, 9 }
  0x3f   : > { %s2893_s21 = scalar_select %p2452_p10, 1, 0 }
  0x40   : > { %s1904_s16 = sshll.u32 %s269_s12, 5  ;;  %s2461_s10 = scalar_lea.hbm %s2874_s0, %s1983_s22 }
  0x41   : > { %s273_s11 = scalar_lea.vmem [#allocation3], %s1904_s16  ;;  %p2463_p11 = pnand %p2038_p0, %p41_p5 }
  0x42   : > { %s280_s13 = sshll.u32 %s273_s11, 4  ;;  %s2469_s15 = scalar_lea.sflag [#allocation4], %s269_s12  ;;  %s2467_s13 = int_to_ptr.vmem [resolvable:$true] %s280_s13 }
  0x43   : > { %s2193_s18 = scalar_lea.hbm %s2461_s10, 512  ;;  %p2195_p1 = pneg %p2463_p11 }
  0x44   : > { %p2194_p7 = scmp.ne.s32.totalorder %s2461_s10, %s2193_s18  ;;  %s2198_s16 = scalar_lea.hbm %s2874_s0, 1024 }
  0x45   : > { %p2199_p2 = scmp.lt.s32.totalorder %s2461_s10, %s2874_s0  ;;  %p2200_p4 = scmp.lt.s32.totalorder %s2198_s16, %s2193_s18 }
  0x46   : > { %p2196_p9 = pnand %p2195_p1, %p2194_p7 }
  0x47   : > { %p2201_p6 = por %p2200_p4, %p2199_p2 }
  0x48   : > { %p2197_p13 = pneg %p2196_p9 }
  0x4a   : > { %p2202_p12 = pnand %p2201_p6, %p2197_p13 }
  0x4c   : > { %2205 = shalt.err (!%p2202_p12)
}
  0x4d   : > { %s2206_s12 = scalar_lea.vmem %s2467_s13, 512  ;;  %s2302_s11 = smov [#allocation3]  }
  0x4e   : > { %p2207_p0 = scmp.ne.s32.totalorder %s2467_s13, %s2206_s12  ;;  %s2211_s2 = sshll.u32 %s2302_s11, 4  ;;  %s2212_s2 = int_to_ptr.vmem [resolvable:$false] %s2211_s2 }
  0x4f   : > { %s2213_s19 = scalar_lea.vmem %s2212_s2, 1024  ;;  %p2214_p7 = scmp.lt.s32.totalorder %s2467_s13, %s2212_s2 }
  0x50   : > { %p2209_p5 = pnand %p2207_p0, %p2195_p1  ;;  %p2215_p9 = scmp.lt.s32.totalorder %s2213_s19, %s2206_s12 }
  0x52   : > { %p2210_p3 = pneg %p2209_p5  ;;  %p2216_p10 = por %p2215_p9, %p2214_p7 }
  0x54   : > { %p2217_p8 = pnand %p2216_p10, %p2210_p3 }
  0x56   : > { %2220 = shalt.err (!%p2217_p8)
}
  0x57   : > { %s2303_s18 = smov 128   ;;  %s2304_s22 = smov 8  }
  0x58   : > { %2030 = dma.hbm_to_vmem [thread:$0]  (!%p2463_p11), %s2461_s10, 512, %s2467_s13, %s2469_s15, %s2303_s18, %s2303_s18, %s2304_s22  }
  0x59   : > { %p2895_p1 = scmp.ne.s32.totalorder %s2889_s9, 0 }
  0x5a   : > { %s2493_s16 = sand.u32 (!%p2895_p1), 1, %s2285_s25   ;;  %p2896_p8 = scmp.ne.s32.totalorder (!%p2895_p1), %s2887_s30, 0 }
  0x5b   : > { %292 = sbr.rel (%p2895_p1) target bundleno = 1742 (0x6ce), region = 48  ;;  %s1908_s2 = sshll.u32 (!%p2895_p1), %s2493_s16, 5 }
  0x5c   : > { %s295_s23 = scalar_lea.sflag (!%p2895_p1), [#allocation4], %s2493_s16  ;;  %s298_s29 = scalar_lea.vmem (!%p2895_p1), [#allocation3], %s1908_s2 }
  0x60   : > { %2264 = dma.done.wait (%p2896_p8), %s295_s23, 512  }
  0x61   : > { %2266 = vsyncadd (%p2896_p8), %s295_s23, 4294966784  ;;  %p2897_p10 = scmp.eq.s32.totalorder %s2379_s28, 0 }
  0x63   : > { %2268 = dma.done.wait (%p2897_p10), [#allocation7], 4608   ;;  %p2898_p11 = pmov %p2897_p10 }
  0x64   : > { %p2899_p13 = pmov %p2897_p10 }
  0x65   : > { %2270 = vsyncadd (%p2898_p11), [#allocation7], 4294962688 }
  0x66   : > { %2272 = dma.done.wait (%p2899_p13), [#allocation10], 1152   ;;  %p2900_p2 = pmov %p2897_p10 }
  0x67   : > { %v2305_v0 = vmov 0   ;;  %v2512_v1 = vld [vmem:[%s298_s29 + $0x14] ss:$8 sps:$4 sm:$0xff]   ;;  %v2514_v2 = vld [vmem:[%s298_s29 + $0x10] ss:$8 sps:$4 sm:$0xff]   ;;  %v485_v5 = vld [vmem:[#allocation6 + $0x8] sm:$0xff] }
  0x68   : > { %2274 = vsyncadd (%p2900_p2), [#allocation10], 4294966144  ;;  %443 = vmatprep.mubr.bf16.mxu1 %v2305_v0  ;;  %423 = vmatprep.subr.bf16.mxu1 %v2512_v1  ;;  %v2517_v3 = vld [vmem:[%s298_s29 + $0x4] ss:$8 sps:$4 sm:$0xff]   ;;  %v2520_v4 = vld [vmem:[%s298_s29] ss:$8 sps:$4 sm:$0xff]  }
  0x69   : > { %424 = vmatpush1.bf16.msra.mxu1 %v2514_v2  ;;  %v2102_v6 = vld [vmem:[%s2875_s1] sm:$0xff]   ;;  %vm398_vm0 = vcmask 261120   ;;  %v2103_v8 = vld [vmem:[%s2875_s1 + $0x8] sm:$0xff]   ;;  %v2104_v9 = vld [vmem:[%s2875_s1 + $0x10] sm:$0xff]   ;;  %v2306_v17 = vmov 0.0   ;;  %vm563_vm1 = vcmask 64512  }
  0x6a   : > { %425 = vmatprep.subr.bf16.mxu1 %v2517_v3  ;;  %v484_v7 = vld [vmem:[#allocation6] sm:$0xff]  ;;  %v2105_v10 = vld [vmem:[%s2875_s1 + $0x18] sm:$0xff]   ;;  %v486_v14 = vld [vmem:[#allocation8] sm:$0xff]  ;;  %1184 = vmatprep.mubr.f32.mxu0 %v2306_v17  ;;  %vm920_vm2 = vcmask 130048   ;;  %vm1113_vm3 = vcmask 326656   ;;  %vm1346_vm4 = vcmask 785408  }
  0x6b   : > { %v487_v11 = vld [vmem:[#allocation8 + $0x8] sm:$0xff]  ;;  %v661_v31 = vld [vmem:[#allocation6 + $0x10] sm:$0xff]  ;;  %v664_v36 = vld [vmem:[#allocation8 + $0x18] sm:$0xff]  ;;  %s2307_s19 = smov 13   ;;  %s2308_s18 = smov 12  }
  0x6c   : > { %v662_v18 = vld [vmem:[#allocation6 + $0x18] sm:$0xff]  ;;  %v663_v37 = vld [vmem:[#allocation8 + $0x10] sm:$0xff]  ;;  %v839_v45 = vld [vmem:[#allocation6 + $0x30] sm:$0xff]  ;;  %s2309_s22 = smov 11   ;;  %s2310_s23 = smov 1  }
  0x6d   : > { %426 = vmatpush1.bf16.msra.mxu1 %v2520_v4  ;;  %v840_v38 = vld [vmem:[#allocation6 + $0x38] sm:$0xff]  ;;  %v838_v47 = vld [vmem:[#allocation6 + $0x28] sm:$0xff]  ;;  %v837_v49 = vld [vmem:[#allocation6 + $0x20] sm:$0xff]  ;;  %s2311_s29 = smov 127   ;;  %s2312_s30 = smov 117  }
  0x6e   : > { %518 = vmatprep.subr.mxu1 %v485_v5  ;;  %v844_v52 = vld [vmem:[#allocation8 + $0x38] sm:$0xff]  ;;  %v843_v53 = vld [vmem:[#allocation8 + $0x30] sm:$0xff]  ;;  %v842_v54 = vld [vmem:[#allocation8 + $0x28] sm:$0xff]  ;;  %s2313_s9 = smov 116   ;;  %s2314_s10 = smov 115  }
  0x6f   : > { %v841_v55 = vld [vmem:[#allocation8 + $0x20] sm:$0xff]  ;;  %v1027_v56 = vld [vmem:[#allocation6 + $0x88] sm:$0xff]  ;;  %v1026_v63 = vld [vmem:[#allocation6 + $0x80] sm:$0xff]  ;;  %s1783_s15 = scalar_lea.sflag [#allocation5], %s2493_s16  ;;  %p2901_p6 = scmp.ne.s32.totalorder %s2893_s21, 0 }
  0x70   : > { %1921 = vmatmul.mubr.msk.bf16.vlgmr.msra.gmra.mxu1 %vm398_vm0, %v2102_v6  ;;  %v1025_v6 = vld [vmem:[#allocation6 + $0x78] sm:$0xff]  ;;  %s2315_s11 = smov [#allocation11]  }
  0x71   : > { %519 = vmatpush1.xpose.msra.mxu1 %v484_v7  ;;  %453 = vmatprep.mubr.bf16.mxu1 %v2305_v0 }
  0x72   : > { %600 = vmatprep.subr.mxu1 %v487_v11 }
  0x78   : > { %1922 = vmatmul.mubr.msk.bf16.gmra.mxu1 %vm398_vm0, %v2103_v8  ;;  %v1024_v8 = vld [vmem:[#allocation6 + $0x70] sm:$0xff] }
  0x79   : > { %463 = vmatprep.mubr.bf16.mxu1 %v2305_v0 }
  0x80   : > { %1923 = vmatmul.mubr.msk.bf16.gmra.mxu1 %vm398_vm0, %v2104_v9 }
  0x81   : > { %473 = vmatprep.mubr.bf16.mxu1 %v2305_v0 }
  0x88   : > { %1924 = vmatmul.mubr.msk.bf16.gmra.mxu1 %vm398_vm0, %v2105_v10  ;;  %v1023_v10 = vld [vmem:[#allocation6 + $0x68] sm:$0xff] }
 0x130   : > { %v445_v12 = vpop.f32.mrf.mxu1 }
 0x132   : > { %v447_v13 = vpop.f32.mrf.mxu1 }
 0x133   : > { %552 = vmatprep.mubr.f32.mxu1 %v447_v13  ;;  %v1021_v13 = vld [vmem:[#allocation6 + $0x58] sm:$0xff] }
 0x134   : > { %v449_v15 = vpop.f32.mrf.mxu1  ;;  %553 = vmatmul.mubr.f32.vlgmr.msra.gmra.mxu1 %v445_v12  ;;  %v1022_v12 = vld [vmem:[#allocation6 + $0x60] sm:$0xff] }
 0x135   : > { %601 = vmatpush1.msra.mxu1 %v486_v14  ;;  %v1020_v14 = vld [vmem:[#allocation6 + $0x50] sm:$0xff] }
 0x136   : > { %v451_v16 = vpop.f32.mrf.mxu1  ;;  %695 = vmatprep.subr.mxu1 %v662_v18  ;;  %v1037_v18 = vld [vmem:[#allocation8 + $0x88] sm:$0xff] }
 0x137   : > { %557 = vmatprep.mubr.f32.mxu1 %v451_v16  ;;  %v1018_v16 = vld [vmem:[#allocation6 + $0x40] sm:$0xff]  ;;  %1142 = vmatprep.subr.mxu0 %v1037_v18 }
 0x138   : > { %558 = vmatmul.mubr.f32.gmra.mxu1 %v449_v15  ;;  %v455_v19 = vpop.f32.mrf.mxu1  ;;  %v1019_v15 = vld [vmem:[#allocation6 + $0x48] sm:$0xff] }
 0x139   : > { %634 = vmatprep.mubr.f32.mxu1 %v2306_v17 }
 0x13a   : > { %v457_v20 = vpop.f32.mrf.mxu1 }
 0x13c   : > { %v459_v21 = vpop.f32.mrf.mxu1 }
 0x13e   : > { %v461_v22 = vpop.f32.mrf.mxu1 }
 0x140   : > { %v465_v23 = vpop.f32.mrf.mxu1 }
 0x142   : > { %v467_v24 = vpop.f32.mrf.mxu1 }
 0x144   : > { %v469_v25 = vpop.f32.mrf.mxu1 }
 0x146   : > { %v471_v26 = vpop.f32.mrf.mxu1 }
 0x148   : > { %v2541_v27 = vpop.f32.mrf.mxu1 }
 0x14a   : > { %v2543_v28 = vpop.f32.mrf.mxu1 }
 0x14c   : > { %v2545_v29 = vpop.f32.mrf.mxu1 }
 0x14e   : > { %v2547_v30 = vpop.f32.mrf.mxu1 }
 0x1f4   : > { %v554_v32 = vpop.f32.mrf.mxu1 }
 0x1f5   : > { %1925 = vmatmul.mubr.msk.f32.vlgmr.msra.gmra.mxu1 %vm563_vm1, %v554_v32 }
 0x1f6   : > { %696 = vmatpush1.xpose.msra.mxu1 %v661_v31  ;;  %v556_v33 = vpop.f32.mrf.mxu1  ;;  %640 = vmatprep.mubr.f32.mxu1 %v2306_v17 }
 0x1f7   : > { %776 = vmatprep.subr.mxu1 %v664_v36 }
 0x1f8   : > { %v559_v34 = vpop.f32.mrf.mxu1 }
 0x1f9   : > { %1926 = vmatmul.mubr.msk.f32.gmra.mxu1 %vm563_vm1, %v559_v34 }
 0x1fa   : > { %v561_v35 = vpop.f32.mrf.mxu1  ;;  %729 = vmatprep.mubr.f32.mxu1 %v457_v20  ;;  %v1035_v20 = vld [vmem:[#allocation8 + $0x78] sm:$0xff] }
 0x1fd   : > { %730 = vmatmul.mubr.f32.vlgmr.msra.gmra.mxu1 %v455_v19  ;;  %v1036_v19 = vld [vmem:[#allocation8 + $0x80] sm:$0xff] }
 0x1fe   : > { %734 = vmatprep.mubr.f32.mxu1 %v461_v22  ;;  %777 = vmatpush1.msra.mxu1 %v663_v37  ;;  %v1033_v22 = vld [vmem:[#allocation8 + $0x68] sm:$0xff] }
 0x1ff   : > { %873 = vmatprep.subr.mxu1 %v840_v38  ;;  %1143 = vmatpush1.msra.mxu0 %v1036_v19 }
 0x200   : > { %1144 = vmatprep.subr.mxu0 %v1035_v20 }
 0x201   : > { %735 = vmatmul.mubr.f32.gmra.mxu1 %v459_v21  ;;  %v1034_v21 = vld [vmem:[#allocation8 + $0x70] sm:$0xff] }
 0x202   : > { %810 = vmatprep.mubr.f32.mxu1 %v2306_v17  ;;  %1145 = vmatpush1.msra.mxu0 %v1034_v21 }
 0x203   : > { %1146 = vmatprep.subr.mxu0 %v1033_v22 }
 0x2b5   : > { %v2553_v39 = vpop.f32.mrf.mxu1 }
 0x2b7   : > { %v2555_v40 = vpop.f32.mrf.mxu1 }
 0x2b9   : > { %v2557_v41 = vpop.f32.mrf.mxu1 }
 0x2ba   : > { %v1993_v42 = vpack.c.bf16 %v2557_v41, %v2553_v39  ;;  %v2108_v39 = vld [vmem:[#allocation9 + $0x10] sm:$0xff]   ;;  %v2113_v41 = vld [vmem:[#allocation9 + $0x38] sm:$0xff]  }
 0x2bb   : > { %v2561_v43 = vpop.f32.mrf.mxu1 }
 0x2bc   : > { %v1994_v44 = vpack.c.bf16 %v2561_v43, %v2555_v40  ;;  %v2107_v40 = vld [vmem:[#allocation9 + $0x8] sm:$0xff]  }
 0x2bd   : > { %v731_v46 = vpop.f32.mrf.mxu1 }
 0x2be   : > { %1929 = vmatmul.mubr.msk.f32.vlgmr.msra.gmra.mxu1 %vm563_vm1, %v731_v46 }
 0x2bf   : > { %874 = vmatpush1.xpose.msra.mxu1 %v839_v45  ;;  %v733_v48 = vpop.f32.mrf.mxu1  ;;  %816 = vmatprep.mubr.f32.mxu1 %v2306_v17 }
 0x2c0   : > { %875 = vmatprep.subr.mxu1 %v838_v47 }
 0x2c1   : > { %v736_v50 = vpop.f32.mrf.mxu1 }
 0x2c2   : > { %1930 = vmatmul.mubr.msk.f32.gmra.mxu1 %vm563_vm1, %v736_v50 }
 0x2c3   : > { %876 = vmatpush1.xpose.msra.mxu1 %v837_v49  ;;  %v738_v51 = vpop.f32.mrf.mxu1  ;;  %909 = vmatprep.mubr.f32.mxu1 %v467_v24  ;;  %v1031_v24 = vld [vmem:[#allocation8 + $0x58] sm:$0xff] }
 0x2c4   : > { %955 = vmatprep.subr.mxu1 %v844_v52 }
 0x2c6   : > { %910 = vmatmul.mubr.f32.vlgmr.msra.gmra.mxu1 %v465_v23  ;;  %v1032_v23 = vld [vmem:[#allocation8 + $0x60] sm:$0xff] }
 0x2c7   : > { %914 = vmatprep.mubr.f32.mxu1 %v471_v26  ;;  %956 = vmatpush1.msra.mxu1 %v843_v53  ;;  %v1029_v26 = vld [vmem:[#allocation8 + $0x48] sm:$0xff] }
 0x2c8   : > { %957 = vmatprep.subr.mxu1 %v842_v54  ;;  %1147 = vmatpush1.msra.mxu0 %v1032_v23 }
 0x2c9   : > { %958 = vmatpush1.msra.mxu1 %v841_v55  ;;  %1148 = vmatprep.subr.mxu0 %v1031_v24 }
 0x2ca   : > { %915 = vmatmul.mubr.f32.gmra.mxu1 %v469_v25  ;;  %1060 = vmatprep.subr.mxu1 %v1027_v56  ;;  %v1030_v25 = vld [vmem:[#allocation8 + $0x50] sm:$0xff] }
 0x2cb   : > { %991 = vmatprep.mubr.f32.mxu1 %v2306_v17  ;;  %1149 = vmatpush1.msra.mxu0 %v1030_v25 }
 0x2cc   : > { %1150 = vmatprep.subr.mxu0 %v1029_v26 }
 0x37e   : > { %v2569_v57 = vpop.f32.mrf.mxu1 }
 0x380   : > { %v2571_v58 = vpop.f32.mrf.mxu1 }
 0x382   : > { %v2573_v59 = vpop.f32.mrf.mxu1 }
 0x383   : > { %v1995_v60 = vpack.c.bf16 %v2573_v59, %v2569_v57 }
 0x384   : > { %v2577_v61 = vpop.f32.mrf.mxu1 }
 0x385   : > { %v1996_v62 = vpack.c.bf16 %v2577_v61, %v2571_v58 }
 0x386   : > { %v911_v5 = vpop.f32.mrf.mxu1 }
 0x387   : > { %1933 = vmatmul.mubr.msk.f32.vlgmr.msra.gmra.mxu1 %vm920_vm2, %v911_v5 }
 0x388   : > { %1061 = vmatpush1.xpose.msra.mxu1 %v1026_v63  ;;  %v913_v7 = vpop.f32.mrf.mxu1  ;;  %997 = vmatprep.mubr.f32.mxu1 %v2306_v17 }
 0x389   : > { %1062 = vmatprep.subr.mxu1 %v1025_v6 }
 0x38a   : > { %v916_v9 = vpop.f32.mrf.mxu1 }
 0x38b   : > { %1934 = vmatmul.mubr.msk.f32.gmra.mxu1 %vm920_vm2, %v916_v9 }
 0x38c   : > { %1063 = vmatpush1.xpose.msra.mxu1 %v1024_v8  ;;  %v918_v11 = vpop.f32.mrf.mxu1  ;;  %1102 = vmatprep.mubr.f32.mxu1 %v2543_v28 }
 0x38d   : > { %1064 = vmatprep.subr.mxu1 %v1023_v10 }
 0x390   : > { %1065 = vmatpush1.xpose.msra.mxu1 %v1022_v12 }
 0x391   : > { %1066 = vmatprep.subr.mxu1 %v1021_v13 }
 0x394   : > { %1067 = vmatpush1.xpose.msra.mxu1 %v1020_v14 }
 0x395   : > { %1068 = vmatprep.subr.mxu1 %v1019_v15 }
 0x398   : > { %1069 = vmatpush1.xpose.msra.mxu1 %v1018_v16 }
 0x39b   : > { %1103 = vmatmul.mubr.f32.vlgmr.msra.gmra.mxu1 %v2541_v27  ;;  %v1028_v27 = vld [vmem:[#allocation8 + $0x40] sm:$0xff] }
 0x39c   : > { %1107 = vmatprep.mubr.f32.mxu1 %v2547_v30  ;;  %1151 = vmatpush1.msra.mxu0 %v1028_v27 }
 0x39f   : > { %1108 = vmatmul.mubr.f32.gmra.mxu1 %v2545_v29 }
 0x447   : > { %v993_v28 = vpop.f32.mrf.mxu1 }
 0x449   : > { %v995_v29 = vpop.f32.mrf.mxu1 }
 0x44b   : > { %v999_v30 = vpop.f32.mrf.mxu1 }
 0x44c   : > { %v1997_v31 = vpack.c.bf16 %v999_v30, %v993_v28 }
 0x44d   : > { %v1001_v32 = vpop.f32.mrf.mxu1 }
 0x44e   : > { %v1998_v33 = vpack.c.bf16 %v1001_v32, %v995_v29 }
 0x45b   : > { %v1104_v34 = vpop.f32.mrf.mxu1 }
 0x45c   : > { %1937 = vmatmul.mubr.msk.f32.vlgmr.msra.gmra.mxu0 %vm1113_vm3, %v1104_v34 }
 0x45d   : > { %v1106_v35 = vpop.f32.mrf.mxu1  ;;  %1190 = vmatprep.mubr.f32.mxu0 %v2306_v17  ;;  %v2106_v17 = vld [vmem:[#allocation9] sm:$0xff]  }
 0x45f   : > { %v1109_v36 = vpop.f32.mrf.mxu1 }
 0x460   : > { %1938 = vmatmul.mubr.msk.f32.gmra.mxu0 %vm1113_vm3, %v1109_v36 }
 0x461   : > { %v1111_v37 = vpop.f32.mrf.mxu1  ;;  %1406 = vmatprep.mubr.bf16.mxu0 %v2305_v0 }
 0x51c   : > { %v1186_v38 = vpop.f32.mrf.mxu0 }
 0x51e   : > { %v1188_v45 = vpop.f32.mrf.mxu0 }
 0x520   : > { %v1192_v46 = vpop.f32.mrf.mxu0 }
 0x521   : > { %v1999_v49 = vpack.c.bf16 %v1192_v46, %v1186_v38  ;;  %v1505_v38 = vlaneseq }
 0x522   : > { %v1194_v47 = vpop.f32.mrf.mxu0 }
 0x523   : > { %v2000_v48 = vpack.c.bf16 %v1194_v47, %v1188_v45  ;;  %v1515_v46 = vshrl.u32 %v1505_v38, 7 }
 0x525   : > { %1378 = vmatprep.subr.bf16.mxu0 %v2000_v48  ;;  %v2639_v48 = vand.u32 127, %v1505_v38 }
 0x526   : > { %1379 = vmatpush1.bf16.msra.mxu0 %v1999_v49  ;;  %v1516_v49 = vsub.s32 0, %v1515_v46 }
 0x527   : > { %1380 = vmatprep.subr.bf16.mxu0 %v1998_v33  ;;  %vm1507_vm5 = vcmp.lt.s32.totalorder %v2639_v48, 13  ;;  %vm1540_vm6 = vcmp.lt.s32.totalorder %v2639_v48, 12  ;;  %vm1574_vm7 = vcmp.lt.s32.totalorder %v2639_v48, 11  ;;  %vm1608_vm8 = vcmp.lt.s32.totalorder %v2639_v48, 1 }
 0x528   : > { %vm1642_vm9 = vcmp.lt.s32.totalorder %v2639_v48, 127  ;;  %vm1676_vm10 = vcmp.lt.s32.totalorder %v2639_v48, 117  ;;  %vm1710_vm11 = vcmp.lt.s32.totalorder %v2639_v48, 116  ;;  %vm1744_vm12 = vcmp.lt.s32.totalorder %v2639_v48, 115 }
 0x52a   : > { %1381 = vmatpush1.bf16.msra.mxu0 %v1997_v31 }
 0x52b   : > { %1382 = vmatprep.subr.bf16.mxu0 %v1996_v62 }
 0x52e   : > { %1383 = vmatpush1.bf16.msra.mxu0 %v1995_v60 }
 0x52f   : > { %1384 = vmatprep.subr.bf16.mxu0 %v1994_v44 }
 0x532   : > { %1385 = vmatpush1.bf16.msra.mxu0 %v1993_v42  ;;  %v2114_v42 = vld [vmem:[#allocation9 + $0x40] sm:$0xff]  }
 0x533   : > { %1386 = vmatprep.subr.bf16.mxu0 %v2512_v1  ;;  %v2109_v1 = vld [vmem:[#allocation9 + $0x18] sm:$0xff]  }
 0x536   : > { %1387 = vmatpush1.bf16.msra.mxu0 %v2514_v2  ;;  %v2110_v2 = vld [vmem:[#allocation9 + $0x20] sm:$0xff]  }
 0x537   : > { %1388 = vmatprep.subr.bf16.mxu0 %v2517_v3  ;;  %v2111_v3 = vld [vmem:[#allocation9 + $0x28] sm:$0xff]  }
 0x53a   : > { %1389 = vmatpush1.bf16.msra.mxu0 %v2520_v4  ;;  %v2112_v4 = vld [vmem:[#allocation9 + $0x30] sm:$0xff]  }
 0x53d   : > { %1962 = vmatmul.mubr.msk.bf16.vlgmr.msra.gmra.mxu0 %vm1346_vm4, %v2106_v17  ;;  %v1520_v17 = vsub.s32 1, %v1515_v46 }
 0x53e   : > { %1416 = vmatprep.mubr.bf16.mxu0 %v2305_v0 }
 0x545   : > { %1963 = vmatmul.mubr.msk.bf16.gmra.mxu0 %vm1346_vm4, %v2107_v40 }
 0x546   : > { %1426 = vmatprep.mubr.bf16.mxu0 %v2305_v0 }
 0x54d   : > { %1964 = vmatmul.mubr.msk.bf16.gmra.mxu0 %vm1346_vm4, %v2108_v39 }
 0x54e   : > { %1436 = vmatprep.mubr.bf16.mxu0 %v2305_v0 }
 0x555   : > { %1965 = vmatmul.mubr.msk.bf16.gmra.mxu0 %vm1346_vm4, %v2109_v1  ;;  %v1512_v1 = vld [vmem:[%s2879_s5] sm:$0x3] }
 0x556   : > { %1446 = vmatprep.mubr.bf16.mxu0 %v2305_v0 }
 0x55d   : > { %1966 = vmatmul.mubr.msk.bf16.gmra.mxu0 %vm1346_vm4, %v2110_v2  ;;  %v1971_v2 = vld [vmem:[%s2879_s5 + $0x2] sm:$0x3] }
 0x55e   : > { %1456 = vmatprep.mubr.bf16.mxu0 %v2305_v0 }
 0x565   : > { %1967 = vmatmul.mubr.msk.bf16.gmra.mxu0 %vm1346_vm4, %v2111_v3  ;;  %v1972_v3 = vld [vmem:[%s2879_s5 + $0x4] sm:$0x3] }
 0x566   : > { %1466 = vmatprep.mubr.bf16.mxu0 %v2305_v0 }
 0x56d   : > { %1968 = vmatmul.mubr.msk.bf16.gmra.mxu0 %vm1346_vm4, %v2112_v4  ;;  %v1517_v4 = vrot.slane %v1512_v1, %v1516_v49 }
 0x56e   : > { %1476 = vmatprep.mubr.bf16.mxu0 %v2305_v0 }
 0x575   : > { %1969 = vmatmul.mubr.msk.bf16.gmra.mxu0 %vm1346_vm4, %v2113_v41  ;;  %v1521_v41 = vrot.slane %v1512_v1, %v1520_v17 }
 0x576   : > { %1486 = vmatprep.mubr.bf16.mxu0 %v2305_v0 }
 0x57d   : > { %1970 = vmatmul.mubr.msk.bf16.gmra.mxu0 %vm1346_vm4, %v2114_v42  ;;  %v1973_v42 = vld [vmem:[%s2879_s5 + $0x6] sm:$0x3] }
 0x5fd   : > { %v1408_v43 = vpop.f32.mrf.mxu0 }
 0x5fe   : > { %1497 = vrot.lane.b32.xlu0 %v1408_v43, %s2307_s19 }
 0x5ff   : > { %v1410_v44 = vpop.f32.mrf.mxu0 }
 0x600   : > { %1501 = vrot.lane.b32.xlu1 %v1410_v44, %s2307_s19 }
 0x601   : > { %v1412_v50 = vpop.f32.mrf.mxu0 }
 0x602   : > { %1499 = vrot.lane.b32.xlu0 %v1412_v50, %s2307_s19  ;;  %v1551_v50 = vrot.slane %v1971_v2, %v1516_v49 }
 0x603   : > { %v1414_v51 = vpop.f32.mrf.mxu0 }
 0x604   : > { %1503 = vrot.lane.b32.xlu1 %v1414_v51, %s2307_s19  ;;  %v1555_v51 = vrot.slane %v1971_v2, %v1520_v17  ;;  %s2225_s19 = sshll.u32 %s2315_s11, 4  ;;  %s2226_s19 = int_to_ptr.vmem [resolvable:$false] %s2225_s19 }
 0x605   : > { %v1418_v52 = vpop.f32.mrf.mxu0 }
 0x606   : > { %1532 = vrot.lane.b32.xlu0 %v1418_v52, %s2308_s18  ;;  %v1974_v52 = vld [vmem:[%s2879_s5 + $0xa] sm:$0x3] }
 0x607   : > { %v1420_v53 = vpop.f32.mrf.mxu0 }
 0x609   : > { %v1422_v54 = vpop.f32.mrf.mxu0 }
 0x60a   : > { %1536 = vrot.lane.b32.xlu0 %v1420_v53, %s2308_s18  ;;  %1534 = vrot.lane.b32.xlu1 %v1422_v54, %s2308_s18 }
 0x60b   : > { %v1424_v0 = vpop.f32.mrf.mxu0 }
 0x60d   : > { %v1428_v55 = vpop.f32.mrf.mxu0 }
 0x60e   : > { %1538 = vrot.lane.b32.xlu1 %v1424_v0, %s2308_s18  ;;  %1566 = vrot.lane.b32.xlu0 %v1428_v55, %s2309_s22  ;;  %v1585_v0 = vrot.slane %v1972_v3, %v1516_v49  ;;  %v1589_v55 = vrot.slane %v1972_v3, %v1520_v17  ;;  %s2227_s18 = scalar_lea.vmem %s2226_s19, 1024 }
 0x60f   : > { %v1430_v56 = vpop.f32.mrf.mxu0 }
 0x611   : > { %v1432_v57 = vpop.f32.mrf.mxu0 }
 0x612   : > { %1570 = vrot.lane.b32.xlu0 %v1430_v56, %s2309_s22  ;;  %1568 = vrot.lane.b32.xlu1 %v1432_v57, %s2309_s22  ;;  %v2672_v56 = vrot.slane %v1973_v42, %v1516_v49  ;;  %v2674_v57 = vrot.slane %v1973_v42, %v1520_v17 }
 0x613   : > { %v1434_v58 = vpop.f32.mrf.mxu0 }
 0x615   : > { %v1438_v59 = vpop.f32.mrf.mxu0 }
 0x616   : > { %1572 = vrot.lane.b32.xlu1 %v1434_v58, %s2309_s22  ;;  %1600 = vrot.lane.b32.xlu0 %v1438_v59, %s2310_s23  ;;  %v1975_v58 = vld [vmem:[%s2879_s5 + $0xc] sm:$0x3]  ;;  %v1976_v59 = vld [vmem:[%s2879_s5 + $0xe] sm:$0x3]  ;;  %s340_s22 = scalar_lea.vmem [#allocation11], %s1908_s2 }
 0x617   : > { %v1440_v60 = vpop.f32.mrf.mxu0 }
 0x619   : > { %v1442_v61 = vpop.f32.mrf.mxu0 }
 0x61a   : > { %1604 = vrot.lane.b32.xlu0 %v1440_v60, %s2310_s23  ;;  %1602 = vrot.lane.b32.xlu1 %v1442_v61, %s2310_s23 }
 0x61b   : > { %v1444_v62 = vpop.f32.mrf.mxu0 }
 0x61d   : > { %v2621_v63 = vpop.f32.mrf.mxu0 }
 0x61e   : > { %1606 = vrot.lane.b32.xlu1 %v1444_v62, %s2310_s23  ;;  %v2687_v62 = vrot.slane %v1974_v52, %v1516_v49  ;;  %s1796_s23 = sshll.u32 %s340_s22, 4  ;;  %s2826_s23 = int_to_ptr.vmem [resolvable:$true] %s1796_s23 }
 0x61f   : > { %v2623_v5 = vpop.f32.mrf.mxu0  ;;  %s2221_s12 = scalar_lea.vmem %s2826_s23, 512  ;;  %p2228_p5 = scmp.lt.s32.totalorder %s2826_s23, %s2226_s19 }
 0x620   : > { %p2222_p4 = scmp.ne.s32.totalorder %s2826_s23, %s2221_s12  ;;  %p2229_p3 = scmp.lt.s32.totalorder %s2227_s18, %s2221_s12 }
 0x621   : > { %v2625_v6 = vpop.f32.mrf.mxu0 }
 0x622   : > { %p2223_p12 = pnand %p2222_p4, %p2901_p6  ;;  %p2230_p7 = por %p2229_p3, %p2228_p5 }
 0x623   : > { %v2627_v7 = vpop.f32.mrf.mxu0 }
 0x624   : > { %p2224_p0 = pneg %p2223_p12 }
 0x625   : > { %v1458_v8 = vpop.f32.mrf.mxu0 }
 0x626   : > { %1634 = vrot.lane.b32.xlu0 %v1458_v8, %s2311_s29  ;;  %v2689_v8 = vrot.slane %v1974_v52, %v1520_v17  ;;  %p2231_p9 = pnand %p2230_p7, %p2224_p0 }
 0x627   : > { %v1460_v9 = vpop.f32.mrf.mxu0 }
 0x629   : > { %v1462_v10 = vpop.f32.mrf.mxu0 }
 0x62a   : > { %1638 = vrot.lane.b32.xlu0 %v1460_v9, %s2311_s29  ;;  %1636 = vrot.lane.b32.xlu1 %v1462_v10, %s2311_s29 }
 0x62b   : > { %v1464_v11 = vpop.f32.mrf.mxu0 }
 0x62d   : > { %v1468_v12 = vpop.f32.mrf.mxu0 }
 0x62e   : > { %1640 = vrot.lane.b32.xlu1 %v1464_v11, %s2311_s29  ;;  %1668 = vrot.lane.b32.xlu0 %v1468_v12, %s2312_s30  ;;  %s1992_s29 = sshll.u32 %s2379_s28, 9 }
 0x62f   : > { %v1470_v13 = vpop.f32.mrf.mxu0  ;;  %s2831_s14 = scalar_lea.hbm %s2881_s7, %s1992_s29 }
 0x631   : > { %v1472_v14 = vpop.f32.mrf.mxu0 }
 0x632   : > { %1672 = vrot.lane.b32.xlu0 %v1470_v13, %s2312_s30  ;;  %1670 = vrot.lane.b32.xlu1 %v1472_v14, %s2312_s30 }
 0x633   : > { %v1474_v15 = vpop.f32.mrf.mxu0 }
 0x635   : > { %v1478_v16 = vpop.f32.mrf.mxu0 }
 0x636   : > { %1674 = vrot.lane.b32.xlu1 %v1474_v15, %s2312_s30  ;;  %1702 = vrot.lane.b32.xlu0 %v1478_v16, %s2313_s9  ;;  %v2698_v15 = vrot.slane %v1975_v58, %v1516_v49  ;;  %v2700_v16 = vrot.slane %v1975_v58, %v1520_v17 }
 0x637   : > { %v1480_v18 = vpop.f32.mrf.mxu0 }
 0x639   : > { %v1482_v19 = vpop.f32.mrf.mxu0 }
 0x63a   : > { %1706 = vrot.lane.b32.xlu0 %v1480_v18, %s2313_s9  ;;  %1704 = vrot.lane.b32.xlu1 %v1482_v19, %s2313_s9  ;;  %v2702_v18 = vrot.slane %v1976_v59, %v1516_v49  ;;  %v2704_v19 = vrot.slane %v1976_v59, %v1520_v17 }
 0x63b   : > { %v1484_v20 = vpop.f32.mrf.mxu0 }
 0x63d   : > { %v1488_v21 = vpop.f32.mrf.mxu0 }
 0x63e   : > { %1708 = vrot.lane.b32.xlu1 %v1484_v20, %s2313_s9  ;;  %1736 = vrot.lane.b32.xlu0 %v1488_v21, %s2314_s10  ;;  %v1977_v20 = vld [vmem:[%s2879_s5 + $0x10] sm:$0x3] }
 0x63f   : > { %v1490_v22 = vpop.f32.mrf.mxu0  ;;  %v2720_v1 = vrot.slane %v1977_v20, %v1516_v49  ;;  %v2722_v2 = vrot.slane %v1977_v20, %v1520_v17 }
 0x641   : > { %v1492_v23 = vpop.f32.mrf.mxu0 }
 0x642   : > { %1740 = vrot.lane.b32.xlu0 %v1490_v22, %s2314_s10  ;;  %1738 = vrot.lane.b32.xlu1 %v1492_v23, %s2314_s10 }
 0x643   : > { %v1494_v24 = vpop.f32.mrf.mxu0 }
 0x646   : > { %1742 = vrot.lane.b32.xlu1 %v1494_v24, %s2314_s10 }
 0x670   : > { %v1498_v25 = vpop.permute.xlu0 %1497 }
 0x672   : > { %v1502_v26 = vpop.permute.xlu1 %1501 }
 0x673   : > { %v1508_v53 = vsel %vm1507_vm5, %v1498_v25, %v1502_v26  ;;  %v1510_v54 = vsel %vm1507_vm5, %v1502_v26, %v1498_v25 }
 0x674   : > { %v1500_v27 = vpop.permute.xlu0 %1499  ;;  %v1524_v11 = vmul.f32 %v1517_v4, %v1510_v54  ;;  %v1525_v12 = vmul.f32 %v1521_v41, %v1508_v53 }
 0x676   : > { %v1504_v28 = vpop.permute.xlu1 %1503  ;;  %v1528_v38 = vadd.f32 %v1524_v11, %v2621_v63  ;;  %v1529_v46 = vadd.f32 %v1525_v12, %v2623_v5 }
 0x677   : > { %v1509_v60 = vsel %vm1507_vm5, %v1500_v27, %v1504_v28  ;;  %v1511_v61 = vsel %vm1507_vm5, %v1504_v28, %v1500_v27 }
 0x678   : > { %v1533_v29 = vpop.permute.xlu0 %1532  ;;  %v1526_v21 = vmul.f32 %v1517_v4, %v1511_v61  ;;  %v1527_v22 = vmul.f32 %v1521_v41, %v1509_v60 }
 0x67a   : > { %v1530_v17 = vadd.f32 %v1526_v21, %v2625_v6  ;;  %v1531_v4 = vadd.f32 %v1527_v22, %v2627_v7 }
 0x67c   : > { %v1537_v30 = vpop.permute.xlu0 %1536  ;;  %v1535_v31 = vpop.permute.xlu1 %1534 }
 0x67d   : > { %v1541_v13 = vsel %vm1540_vm6, %v1533_v29, %v1537_v30  ;;  %v1543_v14 = vsel %vm1540_vm6, %v1537_v30, %v1533_v29 }
 0x67e   : > { %v1558_v25 = vmul.f32 %v1551_v50, %v1543_v14  ;;  %v1559_v26 = vmul.f32 %v1555_v51, %v1541_v13 }
 0x680   : > { %v1539_v32 = vpop.permute.xlu1 %1538  ;;  %v1567_v33 = vpop.permute.xlu0 %1566  ;;  %v1562_v41 = vadd.f32 %v1558_v25, %v1528_v38  ;;  %v1563_v42 = vadd.f32 %v1559_v26, %v1529_v46 }
 0x681   : > { %v1542_v23 = vsel %vm1540_vm6, %v1535_v31, %v1539_v32  ;;  %v1544_v24 = vsel %vm1540_vm6, %v1539_v32, %v1535_v31 }
 0x682   : > { %v1560_v31 = vmul.f32 %v1551_v50, %v1544_v24  ;;  %v1561_v32 = vmul.f32 %v1555_v51, %v1542_v23 }
 0x684   : > { %v2629_v34 = vpop.permute.xlu1 %1568  ;;  %v1571_v35 = vpop.permute.xlu0 %1570  ;;  %v1564_v54 = vadd.f32 %v1560_v31, %v1530_v17 }
 0x685   : > { %v1575_v27 = vsel %vm1574_vm7, %v1567_v33, %v1571_v35  ;;  %v1577_v28 = vsel %vm1574_vm7, %v1571_v35, %v1567_v33 }
 0x686   : > { %v1592_v35 = vmul.f32 %v1585_v0, %v1577_v28  ;;  %v1593_v63 = vmul.f32 %v1589_v55, %v1575_v27 }
 0x688   : > { %v2631_v36 = vpop.permute.xlu1 %1572  ;;  %v2633_v37 = vpop.permute.xlu0 %1600 }
 0x689   : > { %v1576_v3 = vsel %vm1574_vm7, %v2629_v34, %v2631_v36  ;;  %v1578_v33 = vsel %vm1574_vm7, %v2631_v36, %v2629_v34 }
 0x68a   : > { %v1594_v36 = vmul.f32 %v1585_v0, %v1578_v33  ;;  %v1595_v51 = vmul.f32 %v1589_v55, %v1576_v3  ;;  %v1565_v0 = vadd.f32 %v1561_v32, %v1531_v4  ;;  %v1596_v55 = vadd.f32 %v1592_v35, %v1562_v41 }
 0x68c   : > { %v2635_v45 = vpop.permute.xlu1 %1602  ;;  %v2637_v47 = vpop.permute.xlu0 %1604  ;;  %v1598_v12 = vadd.f32 %v1594_v36, %v1564_v54  ;;  %v1599_v13 = vadd.f32 %v1595_v51, %v1565_v0 }
 0x68d   : > { %v1609_v5 = vsel %vm1608_vm8, %v2633_v37, %v2637_v47  ;;  %v1611_v49 = vsel %vm1608_vm8, %v2637_v47, %v2633_v37 }
 0x68e   : > { %v1626_v6 = vmul.f32 %v2672_v56, %v1611_v49  ;;  %v1627_v7 = vmul.f32 %v2674_v57, %v1609_v5 }
 0x690   : > { %v2641_v40 = vpop.permute.xlu1 %1606  ;;  %v1630_v14 = vadd.f32 %v1626_v6, %v1596_v55 }
 0x691   : > { %v1610_v52 = vsel %vm1608_vm8, %v2635_v45, %v2641_v40  ;;  %v1612_v37 = vsel %vm1608_vm8, %v2641_v40, %v2635_v45  ;;  %v1597_v45 = vadd.f32 %v1593_v63, %v1563_v42 }
 0x692   : > { %v1628_v40 = vmul.f32 %v2672_v56, %v1612_v37  ;;  %v1629_v58 = vmul.f32 %v2674_v57, %v1610_v52 }
 0x693   : > { %v1631_v20 = vadd.f32 %v1627_v7, %v1597_v45 }
 0x694   : > { %v1632_v27 = vadd.f32 %v1628_v40, %v1598_v12 }
 0x698   : > { %v2643_v39 = vpop.permute.xlu0 %1634 }
 0x69c   : > { %v2658_v43 = vpop.permute.xlu0 %1638  ;;  %v2660_v44 = vpop.permute.xlu1 %1636 }
 0x69d   : > { %v1643_v47 = vsel %vm1642_vm9, %v2643_v39, %v2658_v43  ;;  %v1645_v53 = vsel %vm1642_vm9, %v2658_v43, %v2643_v39 }
 0x69e   : > { %v1660_v43 = vmul.f32 %v2687_v62, %v1643_v47  ;;  %v1661_v11 = vmul.f32 %v2689_v8, %v1645_v53 }
 0x6a0   : > { %v1641_v9 = vpop.permute.xlu1 %1640  ;;  %v2691_v10 = vpop.permute.xlu0 %1668  ;;  %v1664_v28 = vadd.f32 %v1660_v43, %v1630_v14 }
 0x6a1   : > { %v1644_v59 = vsel %vm1642_vm9, %v2660_v44, %v1641_v9  ;;  %v1646_v60 = vsel %vm1642_vm9, %v1641_v9, %v2660_v44 }
 0x6a2   : > { %v1662_v44 = vmul.f32 %v2687_v62, %v1644_v59  ;;  %v1663_v9 = vmul.f32 %v2689_v8, %v1646_v60  ;;  %v1633_v8 = vadd.f32 %v1629_v58, %v1599_v13  ;;  %v1772_v59 = vld [vmem:[%s2880_s6 + $0x10] sm:$0xff]  ;;  %v1773_v60 = vld [vmem:[%s2880_s6 + $0x18] sm:$0xff] }
 0x6a4   : > { %v1673_v29 = vpop.permute.xlu0 %1672  ;;  %v1671_v30 = vpop.permute.xlu1 %1670  ;;  %v1666_v33 = vadd.f32 %v1662_v44, %v1632_v27  ;;  %v1667_v35 = vadd.f32 %v1663_v9, %v1633_v8 }
 0x6a5   : > { %v1677_v56 = vsel %vm1676_vm10, %v2691_v10, %v1673_v29  ;;  %v1679_v57 = vsel %vm1676_vm10, %v1673_v29, %v2691_v10  ;;  %v1665_v29 = vadd.f32 %v1661_v11, %v1631_v20 }
 0x6a6   : > { %v1694_v23 = vmul.f32 %v2698_v15, %v1677_v56  ;;  %v1695_v24 = vmul.f32 %v2700_v16, %v1679_v57 }
 0x6a8   : > { %v1675_v50 = vpop.permute.xlu1 %1674  ;;  %v1703_v34 = vpop.permute.xlu0 %1702  ;;  %v1698_v63 = vadd.f32 %v1694_v23, %v1664_v28  ;;  %v1699_v5 = vadd.f32 %v1695_v24, %v1665_v29 }
 0x6a9   : > { %v1678_v10 = vsel %vm1676_vm10, %v1671_v30, %v1675_v50  ;;  %v1680_v25 = vsel %vm1676_vm10, %v1675_v50, %v1671_v30 }
 0x6aa   : > { %v1696_v3 = vmul.f32 %v2698_v15, %v1678_v10  ;;  %v1697_v30 = vmul.f32 %v2700_v16, %v1680_v25 }
 0x6ac   : > { %v1707_v61 = vpop.permute.xlu0 %1706  ;;  %v1705_v39 = vpop.permute.xlu1 %1704  ;;  %v1700_v51 = vadd.f32 %v1696_v3, %v1666_v33  ;;  %v1701_v52 = vadd.f32 %v1697_v30, %v1667_v35 }
 0x6ad   : > { %v1711_v21 = vsel %vm1710_vm11, %v1703_v34, %v1707_v61  ;;  %v1713_v22 = vsel %vm1710_vm11, %v1707_v61, %v1703_v34 }
 0x6ae   : > { %v1728_v38 = vmul.f32 %v2702_v18, %v1711_v21  ;;  %v1729_v46 = vmul.f32 %v2704_v19, %v1713_v22 }
 0x6b0   : > { %v1709_v26 = vpop.permute.xlu1 %1708  ;;  %v1737_v62 = vpop.permute.xlu0 %1736  ;;  %v1732_v15 = vadd.f32 %v1728_v38, %v1698_v63  ;;  %v1733_v34 = vadd.f32 %v1729_v46, %v1699_v5 }
 0x6b1   : > { %v1712_v31 = vsel %vm1710_vm11, %v1705_v39, %v1709_v26  ;;  %v1714_v32 = vsel %vm1710_vm11, %v1709_v26, %v1705_v39 }
 0x6b2   : > { %v1730_v4 = vmul.f32 %v2702_v18, %v1712_v31  ;;  %v1731_v41 = vmul.f32 %v2704_v19, %v1714_v32  ;;  %v1770_v18 = vld [vmem:[%s2880_s6] sm:$0xff]  ;;  %v1771_v19 = vld [vmem:[%s2880_s6 + $0x8] sm:$0xff] }
 0x6b4   : > { %v1741_v49 = vpop.permute.xlu0 %1740  ;;  %v1739_v17 = vpop.permute.xlu1 %1738  ;;  %v1734_v47 = vadd.f32 %v1730_v4, %v1700_v51  ;;  %v1735_v53 = vadd.f32 %v1731_v41, %v1701_v52 }
 0x6b5   : > { %v1745_v42 = vsel %vm1744_vm12, %v1737_v62, %v1741_v49  ;;  %v1747_v50 = vsel %vm1744_vm12, %v1741_v49, %v1737_v62 }
 0x6b6   : > { %v1762_v16 = vmul.f32 %v2720_v1, %v1745_v42  ;;  %v1763_v36 = vmul.f32 %v2722_v2, %v1747_v50 }
 0x6b8   : > { %v1766_v37 = vadd.f32 %v1762_v16, %v1732_v15  ;;  %v1767_v6 = vadd.f32 %v1763_v36, %v1733_v34  ;;  %v1743_v7 = vpop.permute.xlu1 %1742 }
 0x6b9   : > { %v1746_v54 = vsel %vm1744_vm12, %v1739_v17, %v1743_v7  ;;  %v1748_v0 = vsel %vm1744_vm12, %v1743_v7, %v1739_v17 }
 0x6ba   : > { %v1774_v55 = vadd.f32 %v1770_v18, %v1766_v37  ;;  %v1775_v45 = vadd.f32 %v1771_v19, %v1767_v6  ;;  %v1764_v40 = vmul.f32 %v2720_v1, %v1746_v54  ;;  %v1765_v58 = vmul.f32 %v2722_v2, %v1748_v0 }
 0x6bc   : > { %1778 = vst [vmem:[%s340_s22] sm:$0xff] %v1774_v55  ;;  %1779 = vst [vmem:[%s340_s22 + $0x8] sm:$0xff] %v1775_v45  ;;  %v1768_v48 = vadd.f32 %v1764_v40, %v1734_v47  ;;  %v1769_v1 = vadd.f32 %v1765_v58, %v1735_v53 }
 0x6be   : > { %v1776_v2 = vadd.f32 %v1772_v59, %v1768_v48  ;;  %v1777_v61 = vadd.f32 %v1773_v60, %v1769_v1 }
 0x6c0   : > { %1780 = vst [vmem:[%s340_s22 + $0x10] sm:$0xff] %v1776_v2  ;;  %1781 = vst [vmem:[%s340_s22 + $0x18] sm:$0xff] %v1777_v61 }
 0x6c1   : > { %2234 = shalt.err (!%p2231_p9)
}
 0x6c2   : > { %s2235_s22 = scalar_lea.hbm %s2831_s14, 512  ;;  %s2239_s9 = scalar_lea.hbm %s2881_s7, 1024 }
 0x6c3   : > { %p2236_p1 = scmp.ne.s32.totalorder %s2831_s14, %s2235_s22  ;;  %p2240_p11 = scmp.lt.s32.totalorder %s2831_s14, %s2881_s7 }
 0x6c4   : > { %p2241_p13 = scmp.lt.s32.totalorder %s2239_s9, %s2235_s22 }
 0x6c5   : > { %p2237_p8 = pnand %p2236_p1, %p2901_p6 }
 0x6c6   : > { %p2242_p2 = por %p2241_p13, %p2240_p11 }
 0x6c7   : > { %p2238_p10 = pneg %p2237_p8 }
 0x6c9   : > { %p2243_p4 = pnand %p2242_p2, %p2238_p10 }
 0x6cb   : > { %2246 = shalt.err (!%p2243_p4)
}
 0x6cc   : > { %s2316_s13 = smov 256   ;;  %s2317_s28 = smov 16  }
 0x6cd   : > { %2015 = dma.vmem_to_hbm [thread:$0]  (%p2901_p6), %s2826_s23, 512, %s2831_s14, %s1783_s15, %s2316_s13, %s2316_s13, %s2317_s28  }
 0x6ce PF: > { %s1811_s12 = sand.u32 1, %s2281_s24   ;;  %p2902_p12 = scmp.ne.s32.totalorder %s2888_s8, 0 }
 0x6cf   : > { %p2903_p0 = scmp.ge.s32.totalorder %s2293_s27, 2  ;;  %s1812_s11 = scalar_lea.sflag [#allocation5], %s1811_s12 }
 0x6d1   : > { %p2032_p5 = pnand %p2903_p0, %p2902_p12 }
 0x6d3   : > { %p2033_p3 = pneg %p2032_p5 }
 0x6d5   : > { %2276 = dma.done.wait (%p2033_p3), %s1812_s11, 512  }
 0x6d6   : > { %2278 = vsyncadd (%p2033_p3), %s1812_s11, 4294966784  ;;  %p22_p7 = scmp.ge.s32.totalorder %s2438_s17, 4   ;;  %s2904_s24 = smov %s2285_s25 }
 0x6d7   : > { %s2905_s25 = smov %s2289_s26  ;;  %s2906_s26 = smov %s2448_s20 }
 0x6d8   : > { %s2907_s27 = smov %s2438_s17  ;;  %24 = sbr.rel (!%p22_p7) target bundleno = 9 (0x9), region = 112 }
 0x6dd   :  { %1817 = vsyncpa [#allocation4], 1 }
 0x6de   :  { %1819 = vsyncpa [#allocation4 + $0x1], 1 }
 0x6df   :  { %1820 = vsyncpa [#allocation7], 1 }
 0x6e0   :  { %1821 = vsyncpa [#allocation10], 1 }
 0x6e1   :  { %1822 = vsyncpa [#allocation5], 1 }
 0x6e2   :  { %1824 = vsyncpa [#allocation5 + $0x1], 1 }

</bundles_post_ra>
